<compile_context>
chip_gen: v5e
topology: v5e:2x2
jax: 0.10.0
libtpu: 0.0.40
codegen_flags: <defaults>
</compile_context>

<pallas_src>
import jax
import jax.numpy as jnp
from jax.experimental import pallas as pl
from jax.experimental.pallas import tpu as pltpu

D_IN = 28 * 28      # 784 (multiple of 8; Mosaic lane-pads the K dim internally)
D_H = 512
D_OUT = 10
D_OUT_PAD = 128     # lane-dense output width (sliced back to 10 in the wrapper)


def _round_up(x, m):
    return (x + m - 1) // m * m


def _pick_bm(B):
    """Static batch-tile choice (B is a Python int at trace time)."""
    if B <= 128:
        return _round_up(B, 8)      # no wasted rows, grid=(1,)
    if B < 512:
        return 128                  # grid >= 2 -> both v7x TensorCores busy
    return 256                      # amortize per-grid-step overhead at large B


def mlp_kernel(x_ref, w1_ref, b1_ref, w2_ref, b2_ref, w3_ref, b3_ref, o_ref):
    # Layer 1: bf16 [BM, 784] @ [784, 512] -> f32 acc, + bias, ReLU
    h1 = jnp.dot(x_ref[...], w1_ref[...], preferred_element_type=jnp.float32)
    h1 = jnp.maximum(h1 + b1_ref[...], 0.0)
    # Layer 2: bf16 [BM, 512] @ [512, 512] -> f32 acc, + bias, ReLU
    h2 = jnp.dot(h1.astype(jnp.bfloat16), w2_ref[...],
                 preferred_element_type=jnp.float32)
    h2 = jnp.maximum(h2 + b2_ref[...], 0.0)
    # Layer 3: bf16 [BM, 512] @ [512, 128] -> f32 acc, + bias, ReLU
    # (final ReLU is part of the module's Sequential)
    h3 = jnp.dot(h2.astype(jnp.bfloat16), w3_ref[...],
                 preferred_element_type=jnp.float32)
    o_ref[...] = jnp.maximum(h3 + b3_ref[...], 0.0).astype(o_ref.dtype)


@jax.jit
def neural_network_forward(x, w1, b1, w2, b2, w3, b3):
    # nn.Flatten: [B, C, H, W] -> [B, C*H*W]
    B = x.shape[0]
    x2d = x.reshape(B, -1)
    assert x2d.shape[1] == D_IN

    BM = _pick_bm(B)
    B_pad = _round_up(B, BM)

    # Cast to bf16 first, then pad only the batch dim (no K-pad needed).
    x_p = x2d.astype(jnp.bfloat16)
    if B_pad != B:
        x_p = jnp.pad(x_p, ((0, B_pad - B), (0, 0)))

    w1_p = w1.astype(jnp.bfloat16)
    w2_p = w2.astype(jnp.bfloat16)
    w3_p = jnp.pad(w3, ((0, 0), (0, D_OUT_PAD - D_OUT))).astype(jnp.bfloat16)
    b1_p = b1.astype(jnp.float32)
    b2_p = b2.astype(jnp.float32)
    b3_p = jnp.pad(b3, ((0, 0), (0, D_OUT_PAD - D_OUT))).astype(jnp.float32)

    rep = lambda i: (0, 0)  # weights/biases replicated across batch tiles
    # Constant-index operands: single-buffered (double-buffering buys nothing).
    wspec = lambda shape: pl.BlockSpec(shape, rep, pipeline_mode=pl.Buffered(1))

    out = pl.pallas_call(
        mlp_kernel,
        out_shape=jax.ShapeDtypeStruct((B_pad, D_OUT_PAD), jnp.float32),
        grid_spec=pltpu.PrefetchScalarGridSpec(
            num_scalar_prefetch=0,
            grid=(B_pad // BM,),
            in_specs=[
                pl.BlockSpec((BM, D_IN), lambda i: (i, 0)),
                wspec((D_IN, D_H)),
                wspec((1, D_H)),
                wspec((D_H, D_H)),
                wspec((1, D_H)),
                wspec((D_H, D_OUT_PAD)),
                wspec((1, D_OUT_PAD)),
            ],
            out_specs=pl.BlockSpec((BM, D_OUT_PAD), lambda i: (i, 0)),
        ),
        compiler_params=pltpu.CompilerParams(
            dimension_semantics=("parallel",),
        ),
    )(x_p, w1_p, b1_p, w2_p, b2_p, w3_p, b3_p)
    return out[:B, :D_OUT]


def init_params(key):
    """Deterministic init mimicking PyTorch nn.Linear default (Kaiming-uniform
    bound = 1/sqrt(fan_in)). Weights stored [in, out] (transpose of PyTorch)."""
    ks = jax.random.split(key, 6)

    def lin(kw, kb, fan_in, fan_out):
        bound = 1.0 / jnp.sqrt(fan_in)
        w = jax.random.uniform(kw, (fan_in, fan_out), jnp.float32, -bound, bound)
        b = jax.random.uniform(kb, (1, fan_out), jnp.float32, -bound, bound)
        return w, b

    w1, b1 = lin(ks[0], ks[1], D_IN, D_H)
    w2, b2 = lin(ks[2], ks[3], D_H, D_H)
    w3, b3 = lin(ks[4], ks[5], D_H, D_OUT)
    return w1, b1, w2, b2, w3, b3


def reference_forward(x, w1, b1, w2, b2, w3, b3):
    # Pure-f32 reference of the module (incl. final ReLU, as in the spec).
    x2d = x.reshape(x.shape[0], -1)
    h = jnp.maximum(x2d @ w1 + b1, 0.0)
    h = jnp.maximum(h @ w2 + b2, 0.0)
    return jnp.maximum(h @ w3 + b3, 0.0)


if __name__ == "__main__":
    key = jax.random.PRNGKey(0)
    kx, kp = jax.random.split(key)
    # Input consistent with the module: MNIST-style [B, 1, 28, 28]
    x = jax.random.normal(kx, (8, 1, 28, 28), dtype=jnp.float32)
    params = init_params(kp)

    out = neural_network_forward(x, *params)
    out = jax.block_until_ready(out)

    ref = reference_forward(x, *params)
    assert out.shape == (8, 10)
    # bf16 MXU inputs / bf16 inter-layer activations with f32 accumulation
    # -> loosened tolerance vs the f32 reference.
    assert jnp.allclose(out, ref, atol=1e-2, rtol=1e-2), float(
        jnp.max(jnp.abs(out - ref))
    )
    print("KERNEL_OK")
</pallas_src>

<mosaic_0001>
module attributes {stable_mosaic.version = 11 : i64} {
  func.func @mlp_kernel(%arg0: i32, %arg1: memref<8x784xbf16, #tpu.memory_space<vmem>>, %arg2: memref<784x512xbf16, #tpu.memory_space<vmem>>, %arg3: memref<1x512xf32, #tpu.memory_space<vmem>>, %arg4: memref<512x512xbf16, #tpu.memory_space<vmem>>, %arg5: memref<1x512xf32, #tpu.memory_space<vmem>>, %arg6: memref<512x128xbf16, #tpu.memory_space<vmem>>, %arg7: memref<1x128xf32, #tpu.memory_space<vmem>>, %arg8: memref<8x128xf32, #tpu.memory_space<vmem>>) attributes {dimension_semantics = [#tpu.dimension_semantics<parallel>], iteration_bounds = array<i64: 1>, scalar_prefetch = 0 : i64, scratch_operands = 0 : i64, tpu.core_type = #tpu.core_type<tc>, window_params = [{transform_indices = @transform_0, window_bounds = array<i64: 8, 784>}, {pipeline_mode = #tpu.pipeline_mode<synchronous>, transform_indices = @transform_1, window_bounds = array<i64: 784, 512>}, {pipeline_mode = #tpu.pipeline_mode<synchronous>, transform_indices = @transform_2, window_bounds = array<i64: 1, 512>}, {pipeline_mode = #tpu.pipeline_mode<synchronous>, transform_indices = @transform_3, window_bounds = array<i64: 512, 512>}, {pipeline_mode = #tpu.pipeline_mode<synchronous>, transform_indices = @transform_4, window_bounds = array<i64: 1, 512>}, {pipeline_mode = #tpu.pipeline_mode<synchronous>, transform_indices = @transform_5, window_bounds = array<i64: 512, 128>}, {pipeline_mode = #tpu.pipeline_mode<synchronous>, transform_indices = @transform_6, window_bounds = array<i64: 1, 128>}, {transform_indices = @transform_7, window_bounds = array<i64: 8, 128>}]} {
    %c0 = arith.constant 0 : index
    %c0_0 = arith.constant 0 : index
    %0 = vector.load %arg1[%c0, %c0_0] : memref<8x784xbf16, #tpu.memory_space<vmem>>, vector<8x784xbf16>
    %c0_1 = arith.constant 0 : index
    %c0_2 = arith.constant 0 : index
    %1 = vector.load %arg2[%c0_1, %c0_2] : memref<784x512xbf16, #tpu.memory_space<vmem>>, vector<784x512xbf16>
    %cst = arith.constant dense<0.000000e+00> : vector<8x512xf32>
    %2 = tpu.matmul %0, %1, %cst {dimension_numbers = #tpu.dot_dimension_numbers<[1], [0], [0], [1], [0, 0, 1, 1], [], []>} : vector<8x784xbf16>, vector<784x512xbf16>, vector<8x512xf32> -> vector<8x512xf32>
    %c0_3 = arith.constant 0 : index
    %c0_4 = arith.constant 0 : index
    %3 = vector.load %arg3[%c0_3, %c0_4] : memref<1x512xf32, #tpu.memory_space<vmem>>, vector<1x512xf32>
    %4 = vector.broadcast %3 : vector<1x512xf32> to vector<8x512xf32>
    %5 = arith.addf %2, %4 : vector<8x512xf32>
    %cst_5 = arith.constant 0.000000e+00 : f32
    %6 = vector.broadcast %cst_5 : f32 to vector<8x512xf32>
    %7 = arith.maximumf %5, %6 : vector<8x512xf32>
    %8 = arith.truncf %7 : vector<8x512xf32> to vector<8x512xbf16>
    %c0_6 = arith.constant 0 : index
    %c0_7 = arith.constant 0 : index
    %9 = vector.load %arg4[%c0_6, %c0_7] : memref<512x512xbf16, #tpu.memory_space<vmem>>, vector<512x512xbf16>
    %cst_8 = arith.constant dense<0.000000e+00> : vector<8x512xf32>
    %10 = tpu.matmul %8, %9, %cst_8 {dimension_numbers = #tpu.dot_dimension_numbers<[1], [0], [0], [1], [0, 0, 1, 1], [], []>} : vector<8x512xbf16>, vector<512x512xbf16>, vector<8x512xf32> -> vector<8x512xf32>
    %c0_9 = arith.constant 0 : index
    %c0_10 = arith.constant 0 : index
    %11 = vector.load %arg5[%c0_9, %c0_10] : memref<1x512xf32, #tpu.memory_space<vmem>>, vector<1x512xf32>
    %12 = vector.broadcast %11 : vector<1x512xf32> to vector<8x512xf32>
    %13 = arith.addf %10, %12 : vector<8x512xf32>
    %cst_11 = arith.constant 0.000000e+00 : f32
    %14 = vector.broadcast %cst_11 : f32 to vector<8x512xf32>
    %15 = arith.maximumf %13, %14 : vector<8x512xf32>
    %16 = arith.truncf %15 : vector<8x512xf32> to vector<8x512xbf16>
    %c0_12 = arith.constant 0 : index
    %c0_13 = arith.constant 0 : index
    %17 = vector.load %arg6[%c0_12, %c0_13] : memref<512x128xbf16, #tpu.memory_space<vmem>>, vector<512x128xbf16>
    %cst_14 = arith.constant dense<0.000000e+00> : vector<8x128xf32>
    %18 = tpu.matmul %16, %17, %cst_14 {dimension_numbers = #tpu.dot_dimension_numbers<[1], [0], [0], [1], [0, 0, 1, 1], [], []>} : vector<8x512xbf16>, vector<512x128xbf16>, vector<8x128xf32> -> vector<8x128xf32>
    %c0_15 = arith.constant 0 : index
    %c0_16 = arith.constant 0 : index
    %19 = vector.load %arg7[%c0_15, %c0_16] : memref<1x128xf32, #tpu.memory_space<vmem>>, vector<1x128xf32>
    %20 = vector.broadcast %19 : vector<1x128xf32> to vector<8x128xf32>
    %21 = arith.addf %18, %20 : vector<8x128xf32>
    %cst_17 = arith.constant 0.000000e+00 : f32
    %22 = vector.broadcast %cst_17 : f32 to vector<8x128xf32>
    %23 = arith.maximumf %21, %22 : vector<8x128xf32>
    %c0_18 = arith.constant 0 : index
    %c0_19 = arith.constant 0 : index
    %24 = vector.load %arg8[%c0_18, %c0_19] : memref<8x128xf32, #tpu.memory_space<vmem>>, vector<8x128xf32>
    tpu.vector_store %arg8[%c0_18, %c0_19], %23 {strides = array<i32>} : memref<8x128xf32, #tpu.memory_space<vmem>>, vector<8x128xf32>,
    return
  }
  func.func @transform_0(%arg0: i32) -> (i32, i32) {
    %c0_i32 = arith.constant 0 : i32
    %c0_i32_0 = arith.constant 0 : i32
    return %arg0, %c0_i32 : i32, i32
  }
  func.func @transform_1(%arg0: i32) -> (i32, i32) {
    %c0_i32 = arith.constant 0 : i32
    %c0_i32_0 = arith.constant 0 : i32
    %c0_i32_1 = arith.constant 0 : i32
    return %c0_i32, %c0_i32_0 : i32, i32
  }
  func.func @transform_2(%arg0: i32) -> (i32, i32) {
    %c0_i32 = arith.constant 0 : i32
    %c0_i32_0 = arith.constant 0 : i32
    %c0_i32_1 = arith.constant 0 : i32
    return %c0_i32, %c0_i32_0 : i32, i32
  }
  func.func @transform_3(%arg0: i32) -> (i32, i32) {
    %c0_i32 = arith.constant 0 : i32
    %c0_i32_0 = arith.constant 0 : i32
    %c0_i32_1 = arith.constant 0 : i32
    return %c0_i32, %c0_i32_0 : i32, i32
  }
  func.func @transform_4(%arg0: i32) -> (i32, i32) {
    %c0_i32 = arith.constant 0 : i32
    %c0_i32_0 = arith.constant 0 : i32
    %c0_i32_1 = arith.constant 0 : i32
    return %c0_i32, %c0_i32_0 : i32, i32
  }
  func.func @transform_5(%arg0: i32) -> (i32, i32) {
    %c0_i32 = arith.constant 0 : i32
    %c0_i32_0 = arith.constant 0 : i32
    %c0_i32_1 = arith.constant 0 : i32
    return %c0_i32, %c0_i32_0 : i32, i32
  }
  func.func @transform_6(%arg0: i32) -> (i32, i32) {
    %c0_i32 = arith.constant 0 : i32
    %c0_i32_0 = arith.constant 0 : i32
    %c0_i32_1 = arith.constant 0 : i32
    return %c0_i32, %c0_i32_0 : i32, i32
  }
  func.func @transform_7(%arg0: i32) -> (i32, i32) {
    %c0_i32 = arith.constant 0 : i32
    %c0_i32_0 = arith.constant 0 : i32
    return %arg0, %c0_i32 : i32, i32
  }
}

</mosaic_0001>

<bundles_post_ra>
// kernel: neural_network_forward.1
= control target key start
LH: loop header
LB: loop body
LE: loop exit
PB: predicated region body
PF: predicated region fallthrough
CT: control target
= control target key end

     0   :  { %vm1242_vm0 = vcmask 130048   ;;  %s6992_s0 = inlined_call_operand.vmem [shape: bf16[8,784], index: 0, kind: input, shape index: {}]   ;;  %s6993_s1 = inlined_call_operand.vmem [shape: bf16[784,512], index: 1, kind: input, shape index: {}]   ;;  %s6994_s2 = inlined_call_operand.vmem [shape: f32[1,512], index: 2, kind: input, shape index: {}]   ;;  %s6995_s3 = inlined_call_operand.vmem [shape: bf16[512,512], index: 3, kind: input, shape index: {}]   ;;  %s6996_s4 = inlined_call_operand.vmem [shape: f32[1,512], index: 4, kind: input, shape index: {}]   ;;  %s6997_s5 = inlined_call_operand.vmem [shape: bf16[512,128], index: 5, kind: input, shape index: {}]   ;;  %s6998_s6 = inlined_call_operand.vmem [shape: f32[1,128], index: 6, kind: input, shape index: {}]   ;;  %s6999_s7 = inlined_call_operand.hbm [shape: f32[8,128], index: 7, kind: output, shape index: {}]  }
   0x1   :  { %v3056_v0 = vld [vmem:[%s6993_s1 + $0xe0] sm:$0xf]  ;;  %v4400_v1 = vld [vmem:[%s6993_s1 + $0xec] sm:$0xf0] }
   0x2   :  { %v3184_v2 = vld [vmem:[%s6993_s1 + $0x1e0] sm:$0xf]  ;;  %v3057_v3 = vor.u32 %v4400_v1, %v3056_v0  ;;  %v4432_v4 = vld [vmem:[%s6993_s1 + $0x1ec] sm:$0xf0] }
   0x3   :  { %v3312_v5 = vld [vmem:[%s6993_s1 + $0x2e0] sm:$0xf]  ;;  %v4464_v6 = vld [vmem:[%s6993_s1 + $0x2ec] sm:$0xf0]  ;;  %v3185_v7 = vor.u32 %v4432_v4, %v3184_v2 }
   0x4   :  { %v3313_v8 = vor.u32 %v4464_v6, %v3312_v5  ;;  %v3440_v9 = vld [vmem:[%s6993_s1 + $0x3e0] sm:$0xf]  ;;  %v4496_v10 = vld [vmem:[%s6993_s1 + $0x3ec] sm:$0xf0]  ;;  %1246 = vmatpush.bf16.msra.mxu0 %v3057_v3 }
   0x5   :  { %v3040_v11 = vld [vmem:[%s6993_s1 + $0xc0] sm:$0xf]  ;;  %v3441_v12 = vor.u32 %v4496_v10, %v3440_v9  ;;  %v4396_v13 = vld [vmem:[%s6993_s1 + $0xcc] sm:$0xf0]  ;;  %1259 = vmatpush.bf16.msra.mxu1 %v3185_v7 }
   0x6   :  { %v3168_v14 = vld [vmem:[%s6993_s1 + $0x1c0] sm:$0xf]  ;;  %v4428_v15 = vld [vmem:[%s6993_s1 + $0x1cc] sm:$0xf0]  ;;  %1272 = vmatpush.bf16.msra.mxu2 %v3313_v8  ;;  %v3041_v16 = vor.u32 %v4396_v13, %v3040_v11 }
   0x7   :  { %v3169_v17 = vor.u32 %v4428_v15, %v3168_v14  ;;  %v3296_v18 = vld [vmem:[%s6993_s1 + $0x2c0] sm:$0xf]  ;;  %v4460_v19 = vld [vmem:[%s6993_s1 + $0x2cc] sm:$0xf0]  ;;  %1285 = vmatpush.bf16.msra.mxu3 %v3441_v12 }
   0x8   :  { %v3424_v20 = vld [vmem:[%s6993_s1 + $0x3c0] sm:$0xf]  ;;  %v3297_v21 = vor.u32 %v4460_v19, %v3296_v18  ;;  %v4492_v22 = vld [vmem:[%s6993_s1 + $0x3cc] sm:$0xf0]  ;;  %1247 = vmatpush.bf16.msra.mxu0 %v3041_v16 }
   0x9   :  { %v3024_v23 = vld [vmem:[%s6993_s1 + $0xa0] sm:$0xf]  ;;  %v4392_v24 = vld [vmem:[%s6993_s1 + $0xac] sm:$0xf0]  ;;  %v3425_v25 = vor.u32 %v4492_v22, %v3424_v20  ;;  %1260 = vmatpush.bf16.msra.mxu1 %v3169_v17 }
   0xa   :  { %v3152_v26 = vld [vmem:[%s6993_s1 + $0x1a0] sm:$0xf]  ;;  %v4424_v27 = vld [vmem:[%s6993_s1 + $0x1ac] sm:$0xf0]  ;;  %v3025_v29 = vor.u32 %v4392_v24, %v3024_v23  ;;  %1273 = vmatpush.bf16.msra.mxu2 %v3297_v21 }
   0xb   :  { %v3280_v28 = vld [vmem:[%s6993_s1 + $0x2a0] sm:$0xf]  ;;  %v4456_v30 = vld [vmem:[%s6993_s1 + $0x2ac] sm:$0xf0]  ;;  %v3153_v33 = vor.u32 %v4424_v27, %v3152_v26  ;;  %1286 = vmatpush.bf16.msra.mxu3 %v3425_v25  ;;  %v29_v25 = vld [vmem:[%s6992_s0 + $0x8] sm:$0xff] }
   0xc   :  { %v3408_v31 = vld [vmem:[%s6993_s1 + $0x3a0] sm:$0xf]  ;;  %v4488_v32 = vld [vmem:[%s6993_s1 + $0x3ac] sm:$0xf0]  ;;  %v3281_v34 = vor.u32 %v4456_v30, %v3280_v28  ;;  %1248 = vmatpush.bf16.msra.mxu0 %v3025_v29 }
   0xd   :  { %v3008_v35 = vld [vmem:[%s6993_s1 + $0x80] sm:$0xf]  ;;  %v4388_v36 = vld [vmem:[%s6993_s1 + $0x8c] sm:$0xf0]  ;;  %v3409_v38 = vor.u32 %v4488_v32, %v3408_v31  ;;  %1261 = vmatpush.bf16.msra.mxu1 %v3153_v33 }
   0xe   :  { %v3136_v37 = vld [vmem:[%s6993_s1 + $0x180] sm:$0xf]  ;;  %v4420_v39 = vld [vmem:[%s6993_s1 + $0x18c] sm:$0xf0]  ;;  %v3009_v44 = vor.u32 %v4388_v36, %v3008_v35  ;;  %1274 = vmatpush.bf16.msra.mxu2 %v3281_v34  ;;  %v4398_v34 = vld [vmem:[%s6993_s1 + $0xe4] sm:$0xf]  ;;  %v244_v36 = vunpack.c.l.b16 %v29_v25 }
   0xf   :  { %v3264_v40 = vld [vmem:[%s6993_s1 + $0x280] sm:$0xf]  ;;  %v4452_v41 = vld [vmem:[%s6993_s1 + $0x28c] sm:$0xf0]  ;;  %v3137_v45 = vor.u32 %v4420_v39, %v3136_v37  ;;  %1287 = vmatpush.bf16.msra.mxu3 %v3409_v38  ;;  %v3058_v35 = vld [vmem:[%s6993_s1 + $0xf0] sm:$0xf0] }
  0x10   :  { %v3392_v42 = vld [vmem:[%s6993_s1 + $0x380] sm:$0xf]  ;;  %v4484_v43 = vld [vmem:[%s6993_s1 + $0x38c] sm:$0xf0]  ;;  %v3265_v46 = vor.u32 %v4452_v41, %v3264_v40  ;;  %1249 = vmatpush.bf16.msra.mxu0 %v3009_v44 }
  0x11   :  { %v2992_v47 = vld [vmem:[%s6993_s1 + $0x60] sm:$0xf]  ;;  %v4384_v48 = vld [vmem:[%s6993_s1 + $0x6c] sm:$0xf0]  ;;  %v3393_v50 = vor.u32 %v4484_v43, %v3392_v42  ;;  %1262 = vmatpush.bf16.msra.mxu1 %v3137_v45  ;;  %v245_v42 = vunpack.c.h.b16 %v29_v25  ;;  %v4418_v25 = vld [vmem:[%s6993_s1 + $0x184] sm:$0xf] }
  0x12   :  { %v3120_v49 = vld [vmem:[%s6993_s1 + $0x160] sm:$0xf]  ;;  %v4416_v51 = vld [vmem:[%s6993_s1 + $0x16c] sm:$0xf0]  ;;  %v2993_v56 = vor.u32 %v4384_v48, %v2992_v47  ;;  %1275 = vmatpush.bf16.msra.mxu2 %v3265_v46  ;;  %v4430_v46 = vld [vmem:[%s6993_s1 + $0x1e4] sm:$0xf] }
  0x13   :  { %v3248_v52 = vld [vmem:[%s6993_s1 + $0x260] sm:$0xf]  ;;  %v4448_v53 = vld [vmem:[%s6993_s1 + $0x26c] sm:$0xf0]  ;;  %v3121_v57 = vor.u32 %v4416_v51, %v3120_v49  ;;  %1288 = vmatpush.bf16.msra.mxu3 %v3393_v50  ;;  %v3186_v47 = vld [vmem:[%s6993_s1 + $0x1f0] sm:$0xf0]  ;;  %v3061_v49 = vor.u32 %v4398_v34, %v3058_v35 }
  0x14   :  { %v3376_v54 = vld [vmem:[%s6993_s1 + $0x360] sm:$0xf]  ;;  %v4480_v55 = vld [vmem:[%s6993_s1 + $0x36c] sm:$0xf0]  ;;  %v3249_v58 = vor.u32 %v4448_v53, %v3248_v52  ;;  %1250 = vmatpush.bf16.msra.mxu0 %v2993_v56  ;;  %v5032_v53 = vpack.c.b16 %v244_v36, %v244_v36  ;;  %v3042_v56 = vld [vmem:[%s6993_s1 + $0xd0] sm:$0xf0] }
  0x15   :  { %v2976_v59 = vld [vmem:[%s6993_s1 + $0x40] sm:$0xf]  ;;  %v4380_v60 = vld [vmem:[%s6993_s1 + $0x4c] sm:$0xf0]  ;;  %v3377_v62 = vor.u32 %v4480_v55, %v3376_v54  ;;  %1263 = vmatpush.bf16.msra.mxu1 %v3121_v57  ;;  %v4394_v55 = vld [vmem:[%s6993_s1 + $0xc4] sm:$0xf] }
  0x16   :  { %v3104_v61 = vld [vmem:[%s6993_s1 + $0x140] sm:$0xf]  ;;  %v4412_v63 = vld [vmem:[%s6993_s1 + $0x14c] sm:$0xf0]  ;;  %v2977_v4 = vor.u32 %v4380_v60, %v2976_v59  ;;  %1276 = vmatpush.bf16.msra.mxu2 %v3249_v58  ;;  %v5045_v60 = vpack.c.b16 %v245_v42, %v245_v42  ;;  %v2994_v34 = vld [vmem:[%s6993_s1 + $0x70] sm:$0xf0] }
  0x17   :  { %v3232_v0 = vld [vmem:[%s6993_s1 + $0x240] sm:$0xf]  ;;  %v4444_v1 = vld [vmem:[%s6993_s1 + $0x24c] sm:$0xf0]  ;;  %v3105_v5 = vor.u32 %v4412_v63, %v3104_v61  ;;  %1289 = vmatpush.bf16.msra.mxu3 %v3377_v62  ;;  %v3189_v61 = vor.u32 %v4430_v46, %v3186_v47  ;;  %v4426_v63 = vld [vmem:[%s6993_s1 + $0x1c4] sm:$0xf] }
  0x18   :  { %v3360_v2 = vld [vmem:[%s6993_s1 + $0x340] sm:$0xf]  ;;  %v4476_v3 = vld [vmem:[%s6993_s1 + $0x34c] sm:$0xf0]  ;;  %v3233_v6 = vor.u32 %v4444_v1, %v3232_v0  ;;  %1251 = vmatpush.bf16.msra.mxu0 %v2977_v4  ;;  %v3170_v0 = vld [vmem:[%s6993_s1 + $0x1d0] sm:$0xf0] }
  0x19   :  { %v2960_v7 = vld [vmem:[%s6993_s1 + $0x20] sm:$0xf]  ;;  %v4376_v8 = vld [vmem:[%s6993_s1 + $0x2c] sm:$0xf0]  ;;  %v3361_v10 = vor.u32 %v4476_v3, %v3360_v2  ;;  %1264 = vmatpush.bf16.msra.mxu1 %v3105_v5  ;;  %v3045_v2 = vor.u32 %v4394_v55, %v3042_v56  ;;  %v4378_v46 = vld [vmem:[%s6993_s1 + $0x44] sm:$0xf] }
  0x1a   :  { %v3088_v9 = vld [vmem:[%s6993_s1 + $0x120] sm:$0xf]  ;;  %v4408_v11 = vld [vmem:[%s6993_s1 + $0x12c] sm:$0xf0]  ;;  %v2961_v17 = vor.u32 %v4376_v8, %v2960_v7  ;;  %1277 = vmatpush.bf16.msra.mxu2 %v3233_v6  ;;  %v4390_v7 = vld [vmem:[%s6993_s1 + $0xa4] sm:$0xf] }
  0x1b   :  { %v3216_v12 = vld [vmem:[%s6993_s1 + $0x220] sm:$0xf]  ;;  %v4440_v13 = vld [vmem:[%s6993_s1 + $0x22c] sm:$0xf0]  ;;  %v3089_v21 = vor.u32 %v4408_v11, %v3088_v9  ;;  %1290 = vmatpush.bf16.msra.mxu3 %v3361_v10  ;;  %v3026_v8 = vld [vmem:[%s6993_s1 + $0xb0] sm:$0xf0]  ;;  %v3173_v10 = vor.u32 %v4426_v63, %v3170_v0 }
  0x1c   :  { %v3344_v14 = vld [vmem:[%s6993_s1 + $0x320] sm:$0xf]  ;;  %v4472_v15 = vld [vmem:[%s6993_s1 + $0x32c] sm:$0xf0]  ;;  %v3217_v22 = vor.u32 %v4440_v13, %v3216_v12  ;;  %1252 = vmatpush.bf16.msra.mxu0 %v2961_v17  ;;  %v4422_v12 = vld [vmem:[%s6993_s1 + $0x1a4] sm:$0xf] }
  0x1d   :  { %v2944_v16 = vld [vmem:[%s6993_s1] sm:$0xf]  ;;  %v4372_v18 = vld [vmem:[%s6993_s1 + $0xc] sm:$0xf0]  ;;  %v3345_v26 = vor.u32 %v4472_v15, %v3344_v14  ;;  %1265 = vmatpush.bf16.msra.mxu1 %v3089_v21  ;;  %v3154_v13 = vld [vmem:[%s6993_s1 + $0x1b0] sm:$0xf0]  ;;  %v3029_v15 = vor.u32 %v4390_v7, %v3026_v8 }
  0x1e   :  { %v3072_v19 = vld [vmem:[%s6993_s1 + $0x100] sm:$0xf]  ;;  %v4404_v20 = vld [vmem:[%s6993_s1 + $0x10c] sm:$0xf0]  ;;  %v2945_v33 = vor.u32 %v4372_v18, %v2944_v16  ;;  %1278 = vmatpush.bf16.msra.mxu2 %v3217_v22  ;;  %v3010_v21 = vld [vmem:[%s6993_s1 + $0x90] sm:$0xf0] }
  0x1f   :  { %v3200_v23 = vld [vmem:[%s6993_s1 + $0x200] sm:$0xf]  ;;  %v4436_v24 = vld [vmem:[%s6993_s1 + $0x20c] sm:$0xf0]  ;;  %v3073_v38 = vor.u32 %v4404_v20, %v3072_v19  ;;  %1291 = vmatpush.bf16.msra.mxu3 %v3345_v26  ;;  %v4386_v20 = vld [vmem:[%s6993_s1 + $0x84] sm:$0xf] }
  0x20   :  { %v3328_v27 = vld [vmem:[%s6993_s1 + $0x300] sm:$0xf]  ;;  %v4468_v28 = vld [vmem:[%s6993_s1 + $0x30c] sm:$0xf0]  ;;  %v3201_v39 = vor.u32 %v4436_v24, %v3200_v23  ;;  %1253 = vmatpush.bf16.msra.mxu0 %v2945_v33  ;;  %v31_v22 = vld [vmem:[%s6992_s0 + $0x18] sm:$0xf]  ;;  %v3157_v23 = vor.u32 %v4422_v12, %v3154_v13 }
  0x21   :  { %v3568_v29 = vld [vmem:[%s6993_s1 + $0x4e0] sm:$0xf]  ;;  %v4528_v30 = vld [vmem:[%s6993_s1 + $0x4ec] sm:$0xf0]  ;;  %v3329_v43 = vor.u32 %v4468_v28, %v3328_v27  ;;  %1266 = vmatpush.bf16.msra.mxu1 %v3073_v38  ;;  %v3138_v26 = vld [vmem:[%s6993_s1 + $0x190] sm:$0xf0]  ;;  %v3013_v28 = vor.u32 %v4386_v20, %v3010_v21  ;;  %v248_v35 = vunpack.c.l.b16 %v31_v22 }
  0x22   :  { %v3696_v31 = vld [vmem:[%s6993_s1 + $0x5e0] sm:$0xf]  ;;  %v4560_v32 = vld [vmem:[%s6993_s1 + $0x5ec] sm:$0xf0]  ;;  %v3569_v44 = vor.u32 %v4528_v30, %v3568_v29  ;;  %1279 = vmatpush.bf16.msra.mxu2 %v3201_v39  ;;  %v4382_v33 = vld [vmem:[%s6993_s1 + $0x64] sm:$0xf]  ;;  %v3141_v36 = vor.u32 %v4418_v25, %v3138_v26 }
  0x23   :  { %v28_v37 = vld [vmem:[%s6992_s0] sm:$0xff]  ;;  %v4564_v45 = vld [vmem:[%s6993_s1 + $0x60c] sm:$0xf0]  ;;  %v3697_v48 = vor.u32 %v4560_v32, %v3696_v31  ;;  %1292 = vmatpush.bf16.msra.mxu3 %v3329_v43  ;;  %v3122_v39 = vld [vmem:[%s6993_s1 + $0x170] sm:$0xf0] }
  0x24   :  { %v3712_v40 = vld [vmem:[%s6993_s1 + $0x600] sm:$0xf]  ;;  %v242_v41 = vunpack.c.l.b16 %v28_v37  ;;  %v4524_v51 = vld [vmem:[%s6993_s1 + $0x4cc] sm:$0xf0]  ;;  %v243_v58 = vunpack.c.h.b16 %v28_v37  ;;  %1298 = vmatpush.bf16.msrb.mxu0 %v3569_v44  ;;  %v4414_v38 = vld [vmem:[%s6993_s1 + $0x164] sm:$0xf] }
  0x25   :  { %v3552_v50 = vld [vmem:[%s6993_s1 + $0x4c0] sm:$0xf]  ;;  %v4556_v54 = vld [vmem:[%s6993_s1 + $0x5cc] sm:$0xf0]  ;;  %v3713_v59 = vor.u32 %v4564_v45, %v3712_v40  ;;  %1311 = vmatpush.bf16.msrb.mxu1 %v3697_v48  ;;  %1280 = vmatmul.bf16.vlgmr.msra.gmra.mxu2 %v5032_v53  ;;  %v2978_v47 = vld [vmem:[%s6993_s1 + $0x50] sm:$0xf0]  ;;  %v5152_v48 = vpack.c.b16 %v248_v35, %v248_v35 }
  0x26   :  { %v3680_v52 = vld [vmem:[%s6993_s1 + $0x5c0] sm:$0xf]  ;;  %v5043_v57 = vpack.c.b16 %v242_v41, %v242_v41  ;;  %v3553_v62 = vor.u32 %v4524_v51, %v3552_v50  ;;  %v4520_v4 = vld [vmem:[%s6993_s1 + $0x4ac] sm:$0xf0]  ;;  %v5073_v9 = vpack.c.b16 %v243_v58, %v243_v58  ;;  %1293 = vmatmul.bf16.vlgmr.msra.gmra.mxu3 %v5045_v60  ;;  %v2997_v41 = vor.u32 %v4382_v33, %v2994_v34  ;;  %v4410_v51 = vld [vmem:[%s6993_s1 + $0x144] sm:$0xf] }
  0x27   :  { %1337 = vmatpush.bf16.msrb.mxu3 %v3061_v49  ;;  %v3681_v1 = vor.u32 %v4556_v54, %v3680_v52  ;;  %v3536_v3 = vld [vmem:[%s6993_s1 + $0x4a0] sm:$0xf]  ;;  %v4552_v6 = vld [vmem:[%s6993_s1 + $0x5ac] sm:$0xf0]  ;;  %1331 = vmatpush.bf16.msrb.mxu2 %v3713_v59  ;;  %v3125_v49 = vor.u32 %v4414_v38, %v3122_v39  ;;  %v3106_v52 = vld [vmem:[%s6993_s1 + $0x150] sm:$0xf0]  ;;  %v2981_v55 = vor.u32 %v4378_v46, %v2978_v47 }
  0x28   :  { %v3664_v5 = vld [vmem:[%s6993_s1 + $0x5a0] sm:$0xf]  ;;  %1254 = vmatmul.bf16.vlgmr.msra.gmra.mxu0 %v5043_v57  ;;  %v3537_v11 = vor.u32 %v4520_v4, %v3536_v3  ;;  %v4516_v17 = vld [vmem:[%s6993_s1 + $0x48c] sm:$0xf0]  ;;  %1267 = vmatmul.bf16.vlgmr.msra.gmra.mxu1 %v5073_v9  ;;  %v2962_v63 = vld [vmem:[%s6993_s1 + $0x30] sm:$0xf0] }
  0x29   :  { %1299 = vmatpush.bf16.msrb.mxu0 %v3553_v62  ;;  %1312 = vmatpush.bf16.msrb.mxu1 %v3681_v1  ;;  %v3665_v14 = vor.u32 %v4552_v6, %v3664_v5  ;;  %v3520_v16 = vld [vmem:[%s6993_s1 + $0x480] sm:$0xf]  ;;  %v4548_v19 = vld [vmem:[%s6993_s1 + $0x58c] sm:$0xf0]  ;;  %v4374_v62 = vld [vmem:[%s6993_s1 + $0x24] sm:$0xf]  ;;  %v3109_v1 = vor.u32 %v4410_v51, %v3106_v52 }
  0x2a   :  { %v3648_v18 = vld [vmem:[%s6993_s1 + $0x580] sm:$0xf]  ;;  %v3521_v24 = vor.u32 %v4516_v17, %v3520_v16  ;;  %v4512_v30 = vld [vmem:[%s6993_s1 + $0x46c] sm:$0xf0]  ;;  %v4406_v0 = vld [vmem:[%s6993_s1 + $0x124] sm:$0xf]  ;;  %v2965_v7 = vor.u32 %v4374_v62, %v2962_v63 }
  0x2b   :  { %1350 = vmatpush.bf16.msra.mxu2 %v3189_v61  ;;  %1338 = vmatpush.bf16.msrb.mxu3 %v3045_v2  ;;  %v3649_v27 = vor.u32 %v4548_v19, %v3648_v18  ;;  %v3504_v29 = vld [vmem:[%s6993_s1 + $0x460] sm:$0xf]  ;;  %v4544_v32 = vld [vmem:[%s6993_s1 + $0x56c] sm:$0xf0]  ;;  %v3090_v3 = vld [vmem:[%s6993_s1 + $0x130] sm:$0xf0] }
  0x2c   :  { %v3632_v31 = vld [vmem:[%s6993_s1 + $0x560] sm:$0xf]  ;;  %v3505_v37 = vor.u32 %v4512_v30, %v3504_v29  ;;  %v4508_v43 = vld [vmem:[%s6993_s1 + $0x44c] sm:$0xf0]  ;;  %v4370_v12 = vld [vmem:[%s6993_s1 + $0x4] sm:$0xf]  ;;  %v3093_v19 = vor.u32 %v4406_v0, %v3090_v3 }
  0x2d   :  { %1300 = vmatpush.bf16.msrb.mxu0 %v3537_v11  ;;  %1313 = vmatpush.bf16.msrb.mxu1 %v3665_v14  ;;  %v3633_v40 = vor.u32 %v4544_v32, %v3632_v31  ;;  %v3488_v42 = vld [vmem:[%s6993_s1 + $0x440] sm:$0xf]  ;;  %v4540_v45 = vld [vmem:[%s6993_s1 + $0x54c] sm:$0xf0]  ;;  %v2946_v13 = vld [vmem:[%s6993_s1 + $0x10] sm:$0xf0] }
  0x2e   :  { %v3616_v44 = vld [vmem:[%s6993_s1 + $0x540] sm:$0xf]  ;;  %v3489_v50 = vor.u32 %v4508_v43, %v3488_v42  ;;  %v4504_v58 = vld [vmem:[%s6993_s1 + $0x42c] sm:$0xf0]  ;;  %v4462_v14 = vld [vmem:[%s6993_s1 + $0x2e4] sm:$0xf]  ;;  %v2949_v25 = vor.u32 %v4370_v12, %v2946_v13 }
  0x2f   :  { %1351 = vmatpush.bf16.msra.mxu2 %v3173_v10  ;;  %1339 = vmatpush.bf16.msrb.mxu3 %v3029_v15  ;;  %v3617_v54 = vor.u32 %v4540_v45, %v3616_v44  ;;  %v3472_v56 = vld [vmem:[%s6993_s1 + $0x420] sm:$0xf]  ;;  %v4536_v61 = vld [vmem:[%s6993_s1 + $0x52c] sm:$0xf0]  ;;  %v3314_v15 = vld [vmem:[%s6993_s1 + $0x2f0] sm:$0xf0] }
  0x30   :  { %v3600_v59 = vld [vmem:[%s6993_s1 + $0x520] sm:$0xf]  ;;  %v3473_v2 = vor.u32 %v4504_v58, %v3472_v56  ;;  %v30_v5 = vld [vmem:[%s6992_s0 + $0x10] sm:$0xff]  ;;  %v4494_v16 = vld [vmem:[%s6993_s1 + $0x3e4] sm:$0xf] }
  0x31   :  { %1301 = vmatpush.bf16.msrb.mxu0 %v3521_v24  ;;  %1314 = vmatpush.bf16.msrb.mxu1 %v3649_v27  ;;  %v3456_v4 = vld [vmem:[%s6993_s1 + $0x400] sm:$0xf]  ;;  %v3601_v6 = vor.u32 %v4536_v61, %v3600_v59  ;;  %v4500_v8 = vld [vmem:[%s6993_s1 + $0x40c] sm:$0xf0]  ;;  %v3442_v17 = vld [vmem:[%s6993_s1 + $0x3f0] sm:$0xf0]  ;;  %v246_v18 = vunpack.c.l.b16 %v30_v5 }
  0x32   :  { %v3584_v10 = vld [vmem:[%s6993_s1 + $0x500] sm:$0xf]  ;;  %v4532_v11 = vld [vmem:[%s6993_s1 + $0x50c] sm:$0xf0]  ;;  %v3457_v20 = vor.u32 %v4500_v8, %v3456_v4  ;;  %v4526_v21 = vld [vmem:[%s6993_s1 + $0x4e4] sm:$0xf]  ;;  %v3445_v29 = vor.u32 %v4494_v16, %v3442_v17 }
  0x33   :  { %1352 = vmatpush.bf16.msra.mxu2 %v3157_v23  ;;  %1340 = vmatpush.bf16.msrb.mxu3 %v3013_v28  ;;  %v3570_v22 = vld [vmem:[%s6993_s1 + $0x4f0] sm:$0xf0]  ;;  %v247_v23 = vunpack.c.h.b16 %v30_v5  ;;  %v3585_v24 = vor.u32 %v4532_v11, %v3584_v10  ;;  %v4402_v26 = vld [vmem:[%s6993_s1 + $0x104] sm:$0xf]  ;;  %v3317_v28 = vor.u32 %v4462_v14, %v3314_v15  ;;  %v5240_v34 = vpack.c.b16 %v246_v18, %v246_v18 }
  0x34   :  { %v3074_v27 = vld [vmem:[%s6993_s1 + $0x110] sm:$0xf0]  ;;  %v4558_v30 = vld [vmem:[%s6993_s1 + $0x5e4] sm:$0xf]  ;;  %v3573_v33 = vor.u32 %v4526_v21, %v3570_v22 }
  0x35   :  { %1302 = vmatpush.bf16.msrb.mxu0 %v3505_v37  ;;  %1315 = vmatpush.bf16.msrb.mxu1 %v3633_v40  ;;  %v3698_v31 = vld [vmem:[%s6993_s1 + $0x5f0] sm:$0xf0]  ;;  %v4458_v32 = vld [vmem:[%s6993_s1 + $0x2c4] sm:$0xf]  ;;  %v3077_v38 = vor.u32 %v4402_v26, %v3074_v27  ;;  %v5251_v39 = vpack.c.b16 %v247_v23, %v247_v23 }
  0x36   :  { %3726 = vmatmul.msk.bf16.vlgmr.msrb.gmra.mxu2 %vm1242_vm0, %v5152_v48  ;;  %v3298_v35 = vld [vmem:[%s6993_s1 + $0x2d0] sm:$0xf0]  ;;  %v4522_v40 = vld [vmem:[%s6993_s1 + $0x4c4] sm:$0xf]  ;;  %v3701_v42 = vor.u32 %v4558_v30, %v3698_v31 }
  0x37   :  { %1353 = vmatpush.bf16.msra.mxu2 %v3141_v36  ;;  %1341 = vmatpush.bf16.msrb.mxu3 %v2997_v41  ;;  %v4490_v36 = vld [vmem:[%s6993_s1 + $0x3c4] sm:$0xf]  ;;  %v3426_v37 = vld [vmem:[%s6993_s1 + $0x3d0] sm:$0xf0]  ;;  %v3301_v43 = vor.u32 %v4458_v32, %v3298_v35 }
  0x38   :  { %v3554_v41 = vld [vmem:[%s6993_s1 + $0x4d0] sm:$0xf0]  ;;  %v3429_v44 = vor.u32 %v4490_v36, %v3426_v37  ;;  %v4554_v45 = vld [vmem:[%s6993_s1 + $0x5c4] sm:$0xf] }
  0x39   :  { %1303 = vmatpush.bf16.msrb.mxu0 %v3489_v50  ;;  %1316 = vmatpush.bf16.msrb.mxu1 %v3617_v54  ;;  %v3682_v46 = vld [vmem:[%s6993_s1 + $0x5d0] sm:$0xf0]  ;;  %v4454_v47 = vld [vmem:[%s6993_s1 + $0x2a4] sm:$0xf] }
  0x3a   :  { %v3282_v50 = vld [vmem:[%s6993_s1 + $0x2b0] sm:$0xf0]  ;;  %v4486_v51 = vld [vmem:[%s6993_s1 + $0x3a4] sm:$0xf]  ;;  %v3685_v56 = vor.u32 %v4554_v45, %v3682_v46 }
  0x3b   :  { %1354 = vmatpush.bf16.msra.mxu2 %v3125_v49  ;;  %1342 = vmatpush.bf16.msrb.mxu3 %v2981_v55  ;;  %v3557_v49 = vor.u32 %v4522_v40, %v3554_v41  ;;  %v3410_v52 = vld [vmem:[%s6993_s1 + $0x3b0] sm:$0xf0]  ;;  %v4518_v54 = vld [vmem:[%s6993_s1 + $0x4a4] sm:$0xf]  ;;  %v3285_v58 = vor.u32 %v4454_v47, %v3282_v50 }
  0x3c   :  { %v3538_v55 = vld [vmem:[%s6993_s1 + $0x4b0] sm:$0xf0]  ;;  %v3413_v59 = vor.u32 %v4486_v51, %v3410_v52  ;;  %v4550_v61 = vld [vmem:[%s6993_s1 + $0x5a4] sm:$0xf] }
  0x3d   :  { %1304 = vmatpush.bf16.msrb.mxu0 %v3473_v2  ;;  %1317 = vmatpush.bf16.msrb.mxu1 %v3601_v6  ;;  %v3666_v62 = vld [vmem:[%s6993_s1 + $0x5b0] sm:$0xf0]  ;;  %v4450_v63 = vld [vmem:[%s6993_s1 + $0x284] sm:$0xf]  ;;  %v3541_v0 = vor.u32 %v4518_v54, %v3538_v55 }
  0x3e   :  { %v4482_v2 = vld [vmem:[%s6993_s1 + $0x384] sm:$0xf]  ;;  %v3394_v3 = vld [vmem:[%s6993_s1 + $0x390] sm:$0xf0]  ;;  %v3669_v6 = vor.u32 %v4550_v61, %v3666_v62 }
  0x3f   :  { %1355 = vmatpush.bf16.msra.mxu2 %v3109_v1  ;;  %1343 = vmatpush.bf16.msrb.mxu3 %v2965_v7  ;;  %v3266_v1 = vld [vmem:[%s6993_s1 + $0x290] sm:$0xf0]  ;;  %v4514_v4 = vld [vmem:[%s6993_s1 + $0x484] sm:$0xf]  ;;  %v3397_v8 = vor.u32 %v4482_v2, %v3394_v3 }
  0x40   :  { %v3522_v5 = vld [vmem:[%s6993_s1 + $0x490] sm:$0xf0]  ;;  %v3269_v7 = vor.u32 %v4450_v63, %v3266_v1  ;;  %v4546_v10 = vld [vmem:[%s6993_s1 + $0x584] sm:$0xf] }
  0x41   :  { %1305 = vmatpush.bf16.msrb.mxu0 %v3457_v20  ;;  %1318 = vmatpush.bf16.msrb.mxu1 %v3585_v24  ;;  %v3650_v11 = vld [vmem:[%s6993_s1 + $0x590] sm:$0xf0]  ;;  %v4446_v12 = vld [vmem:[%s6993_s1 + $0x264] sm:$0xf]  ;;  %v3525_v13 = vor.u32 %v4514_v4, %v3522_v5 }
  0x42   :  { %v3250_v14 = vld [vmem:[%s6993_s1 + $0x270] sm:$0xf0]  ;;  %v4478_v15 = vld [vmem:[%s6993_s1 + $0x364] sm:$0xf] }
  0x43   :  { %1356 = vmatpush.bf16.msra.mxu2 %v3093_v19  ;;  %1344 = vmatpush.bf16.msrb.mxu3 %v2949_v25  ;;  %v3378_v16 = vld [vmem:[%s6993_s1 + $0x370] sm:$0xf0]  ;;  %v4510_v17 = vld [vmem:[%s6993_s1 + $0x464] sm:$0xf]  ;;  %v3653_v19 = vor.u32 %v4546_v10, %v3650_v11  ;;  %v3253_v20 = vor.u32 %v4446_v12, %v3250_v14 }
  0x44   :  { %1306 = vmatmul.bf16.vlgmr.msrb.gmra.mxu0 %v5240_v34  ;;  %1319 = vmatmul.bf16.vlgmr.msrb.gmra.mxu1 %v5251_v39  ;;  %v3506_v18 = vld [vmem:[%s6993_s1 + $0x470] sm:$0xf0]  ;;  %v3381_v21 = vor.u32 %v4478_v15, %v3378_v16  ;;  %v4542_v22 = vld [vmem:[%s6993_s1 + $0x564] sm:$0xf] }
  0x45   :  { %1363 = vmatpush.bf16.msra.mxu0 %v3317_v28  ;;  %1376 = vmatpush.bf16.msra.mxu1 %v3445_v29  ;;  %v3634_v23 = vld [vmem:[%s6993_s1 + $0x570] sm:$0xf0]  ;;  %v4442_v24 = vld [vmem:[%s6993_s1 + $0x244] sm:$0xf]  ;;  %v3509_v25 = vor.u32 %v4510_v17, %v3506_v18 }
  0x46   :  { %1345 = vmatmul.bf16.vlgmr.msrb.gmra.mxu3 %v5043_v57  ;;  %v3234_v26 = vld [vmem:[%s6993_s1 + $0x250] sm:$0xf0]  ;;  %v4474_v27 = vld [vmem:[%s6993_s1 + $0x344] sm:$0xf]  ;;  %v3637_v31 = vor.u32 %v4542_v22, %v3634_v23 }
  0x47   :  { %1389 = vmatpush.bf16.msra.mxu3 %v3573_v33  ;;  %1357 = vmatpush.bf16.msra.mxu2 %v3077_v38  ;;  %v3362_v28 = vld [vmem:[%s6993_s1 + $0x350] sm:$0xf0]  ;;  %v4506_v29 = vld [vmem:[%s6993_s1 + $0x444] sm:$0xf]  ;;  %v3237_v33 = vor.u32 %v4442_v24, %v3234_v26 }
  0x48   :  { %v3490_v30 = vld [vmem:[%s6993_s1 + $0x450] sm:$0xf0]  ;;  %v4538_v32 = vld [vmem:[%s6993_s1 + $0x544] sm:$0xf]  ;;  %v3365_v35 = vor.u32 %v4474_v27, %v3362_v28 }
  0x49   :  { %1364 = vmatpush.bf16.msra.mxu0 %v3301_v43  ;;  %1377 = vmatpush.bf16.msra.mxu1 %v3429_v44  ;;  %v3618_v36 = vld [vmem:[%s6993_s1 + $0x550] sm:$0xf0]  ;;  %v4438_v37 = vld [vmem:[%s6993_s1 + $0x224] sm:$0xf]  ;;  %v3493_v40 = vor.u32 %v4506_v29, %v3490_v30 }
  0x4a   :  { %1358 = vmatmul.bf16.vlgmr.msra.gmra.mxu2 %v5073_v9  ;;  %v3218_v38 = vld [vmem:[%s6993_s1 + $0x230] sm:$0xf0]  ;;  %v4470_v41 = vld [vmem:[%s6993_s1 + $0x324] sm:$0xf]  ;;  %v3621_v45 = vor.u32 %v4538_v32, %v3618_v36 }
  0x4b   :  { %1402 = vmatpush.bf16.msrb.mxu2 %v3701_v42  ;;  %1390 = vmatpush.bf16.msra.mxu3 %v3557_v49  ;;  %v3346_v42 = vld [vmem:[%s6993_s1 + $0x330] sm:$0xf0]  ;;  %v4502_v43 = vld [vmem:[%s6993_s1 + $0x424] sm:$0xf]  ;;  %v3221_v50 = vor.u32 %v4438_v37, %v3218_v38 }
  0x4c   :  { %v3474_v44 = vld [vmem:[%s6993_s1 + $0x430] sm:$0xf0]  ;;  %v4534_v46 = vld [vmem:[%s6993_s1 + $0x524] sm:$0xf]  ;;  %v3349_v51 = vor.u32 %v4470_v41, %v3346_v42 }
  0x4d   :  { %1365 = vmatpush.bf16.msra.mxu0 %v3285_v58  ;;  %1378 = vmatpush.bf16.msra.mxu1 %v3413_v59  ;;  %v3602_v47 = vld [vmem:[%s6993_s1 + $0x530] sm:$0xf0]  ;;  %v4434_v49 = vld [vmem:[%s6993_s1 + $0x204] sm:$0xf] }
  0x4e   :  { %v3202_v52 = vld [vmem:[%s6993_s1 + $0x210] sm:$0xf0]  ;;  %v4466_v54 = vld [vmem:[%s6993_s1 + $0x304] sm:$0xf] }
  0x4f   :  { %1403 = vmatpush.bf16.msrb.mxu2 %v3685_v56  ;;  %1391 = vmatpush.bf16.msra.mxu3 %v3541_v0 }
  0x51   :  { %1366 = vmatpush.bf16.msra.mxu0 %v3269_v7  ;;  %1379 = vmatpush.bf16.msra.mxu1 %v3397_v8 }
  0x53   :  { %1404 = vmatpush.bf16.msrb.mxu2 %v3669_v6  ;;  %1392 = vmatpush.bf16.msra.mxu3 %v3525_v13 }
  0x55   :  { %1367 = vmatpush.bf16.msra.mxu0 %v3253_v20  ;;  %1380 = vmatpush.bf16.msra.mxu1 %v3381_v21 }
  0x57   :  { %1405 = vmatpush.bf16.msrb.mxu2 %v3653_v19  ;;  %1393 = vmatpush.bf16.msra.mxu3 %v3509_v25 }
  0x59   :  { %1368 = vmatpush.bf16.msra.mxu0 %v3237_v33  ;;  %1381 = vmatpush.bf16.msra.mxu1 %v3365_v35 }
  0x5b   :  { %1406 = vmatpush.bf16.msrb.mxu2 %v3637_v31 }
  0x5c   :  { %12 = vsyncpa [#allocation3], 0  ;;  %1394 = vmatpush.bf16.msra.mxu3 %v3493_v40  ;;  %v3477_v55 = vor.u32 %v4502_v43, %v3474_v44  ;;  %v3330_v56 = vld [vmem:[%s6993_s1 + $0x310] sm:$0xf0]  ;;  %v4498_v58 = vld [vmem:[%s6993_s1 + $0x404] sm:$0xf]  ;;  %v3605_v0 = vor.u32 %v4534_v46, %v3602_v47  ;;  %v3205_v4 = vor.u32 %v4434_v49, %v3202_v52 }
  0x5d   :  { %v3458_v59 = vld [vmem:[%s6993_s1 + $0x410] sm:$0xf0]  ;;  %v3064_v61 = vld [vmem:[%s6993_s1 + $0xe8] sm:$0xf]  ;;  %v4401_v62 = vld [vmem:[%s6993_s1 + $0xf4] sm:$0xf0]  ;;  %1369 = vmatpush.bf16.msra.mxu0 %v3221_v50  ;;  %1382 = vmatpush.bf16.msra.mxu1 %v3349_v51  ;;  %v3333_v5 = vor.u32 %v4466_v54, %v3330_v56 }
  0x5e   :  { %v4562_v63 = vld [vmem:[%s6993_s1 + $0x604] sm:$0xf]  ;;  %v3714_v1 = vld [vmem:[%s6993_s1 + $0x610] sm:$0xf0]  ;;  %v3320_v2 = vld [vmem:[%s6993_s1 + $0x2e8] sm:$0xf]  ;;  %v3461_v8 = vor.u32 %v4498_v58, %v3458_v59  ;;  %v3065_v10 = vor.u32 %v4401_v62, %v3064_v61 }
  0x5f   :  { %1407 = vmatpush.bf16.msrb.mxu2 %v3621_v45  ;;  %v4465_v3 = vld [vmem:[%s6993_s1 + $0x2f4] sm:$0xf0]  ;;  %v4530_v6 = vld [vmem:[%s6993_s1 + $0x504] sm:$0xf]  ;;  %v3586_v7 = vld [vmem:[%s6993_s1 + $0x510] sm:$0xf0]  ;;  %v3717_v13 = vor.u32 %v4562_v63, %v3714_v1 }
  0x60   :  { %1395 = vmatpush.bf16.msra.mxu3 %v3477_v55  ;;  %v3448_v11 = vld [vmem:[%s6993_s1 + $0x3e8] sm:$0xf]  ;;  %v4497_v12 = vld [vmem:[%s6993_s1 + $0x3f4] sm:$0xf0]  ;;  %v3321_v16 = vor.u32 %v4465_v3, %v3320_v2  ;;  %v3589_v17 = vor.u32 %v4530_v6, %v3586_v7  ;;  %s4754_s13 = smov [#allocation2]   ;;  %s2933_s17 = sshll.u32 %s6999_s7, 4  ;;  %s2934_s17 = int_to_ptr.hbm [resolvable:$true] %s2933_s17 }
  0x61   :  { %v3192_v14 = vld [vmem:[%s6993_s1 + $0x1e8] sm:$0xf]  ;;  %v4433_v15 = vld [vmem:[%s6993_s1 + $0x1f4] sm:$0xf0]  ;;  %1370 = vmatpush.bf16.msra.mxu0 %v3205_v4  ;;  %1383 = vmatpush.bf16.msra.mxu1 %v3333_v5  ;;  %v3449_v20 = vor.u32 %v4497_v12, %v3448_v11  ;;  %s2931_s14 = sshll.u32 %s4754_s13, 4  ;;  %s2932_s14 = int_to_ptr.vmem [resolvable:$true] %s2931_s14 }
  0x62   :  { %v3048_v18 = vld [vmem:[%s6993_s1 + $0xc8] sm:$0xf]  ;;  %v4397_v19 = vld [vmem:[%s6993_s1 + $0xd4] sm:$0xf0]  ;;  %v3193_v23 = vor.u32 %v4433_v15, %v3192_v14 }
  0x63   :  { %1408 = vmatpush.bf16.msrb.mxu2 %v3605_v0  ;;  %v3304_v21 = vld [vmem:[%s6993_s1 + $0x2c8] sm:$0xf]  ;;  %v4461_v22 = vld [vmem:[%s6993_s1 + $0x2d4] sm:$0xf0]  ;;  %v3049_v26 = vor.u32 %v4397_v19, %v3048_v18 }
  0x64   :  { %1396 = vmatpush.bf16.msra.mxu3 %v3461_v8  ;;  %v3432_v24 = vld [vmem:[%s6993_s1 + $0x3c8] sm:$0xf]  ;;  %v4493_v25 = vld [vmem:[%s6993_s1 + $0x3d4] sm:$0xf0]  ;;  %1371 = vmatmul.bf16.vlgmr.msra.gmra.mxu0 %v5032_v53  ;;  %v3305_v29 = vor.u32 %v4461_v22, %v3304_v21 }
  0x65   :  { %1428 = vmatpush.bf16.msrb.mxu1 %v3065_v10  ;;  %1454 = vmatpush.bf16.msrb.mxu0 %v3321_v16  ;;  %v3176_v27 = vld [vmem:[%s6993_s1 + $0x1c8] sm:$0xf]  ;;  %v4429_v28 = vld [vmem:[%s6993_s1 + $0x1d4] sm:$0xf0]  ;;  %v3433_v32 = vor.u32 %v4493_v25, %v3432_v24 }
  0x66   :  { %v3032_v30 = vld [vmem:[%s6993_s1 + $0xa8] sm:$0xf]  ;;  %v4393_v31 = vld [vmem:[%s6993_s1 + $0xb4] sm:$0xf0]  ;;  %1384 = vmatmul.bf16.vlgmr.msra.gmra.mxu1 %v5045_v60  ;;  %v3177_v36 = vor.u32 %v4429_v28, %v3176_v27 }
  0x67   :  { %1409 = vmatpush.bf16.msrb.mxu2 %v3589_v17  ;;  %1397 = vmatmul.bf16.vlgmr.msra.gmra.mxu3 %v5240_v34  ;;  %v3288_v33 = vld [vmem:[%s6993_s1 + $0x2a8] sm:$0xf]  ;;  %v4457_v35 = vld [vmem:[%s6993_s1 + $0x2b4] sm:$0xf0]  ;;  %v3033_v40 = vor.u32 %v4393_v31, %v3032_v30 }
  0x68   :  { %1422 = vmatpush.bf16.msrb.mxu3 %v3717_v13  ;;  %v3416_v37 = vld [vmem:[%s6993_s1 + $0x3a8] sm:$0xf]  ;;  %v4489_v38 = vld [vmem:[%s6993_s1 + $0x3b4] sm:$0xf0]  ;;  %v3289_v43 = vor.u32 %v4457_v35, %v3288_v33 }
  0x69   :  { %1429 = vmatpush.bf16.msrb.mxu1 %v3049_v26  ;;  %v3160_v41 = vld [vmem:[%s6993_s1 + $0x1a8] sm:$0xf]  ;;  %v4425_v42 = vld [vmem:[%s6993_s1 + $0x1b4] sm:$0xf0]  ;;  %1455 = vmatpush.bf16.msrb.mxu0 %v3305_v29  ;;  %v3417_v46 = vor.u32 %v4489_v38, %v3416_v37 }
  0x6a   :  { %1410 = vmatmul.bf16.vlgmr.msrb.gmra.mxu2 %v5251_v39  ;;  %v3016_v44 = vld [vmem:[%s6993_s1 + $0x88] sm:$0xf]  ;;  %v4389_v45 = vld [vmem:[%s6993_s1 + $0x94] sm:$0xf0]  ;;  %v3161_v50 = vor.u32 %v4425_v42, %v3160_v41 }
  0x6b   :  { %1467 = vmatpush.bf16.msra.mxu2 %v3449_v20  ;;  %v3272_v47 = vld [vmem:[%s6993_s1 + $0x288] sm:$0xf]  ;;  %v4453_v49 = vld [vmem:[%s6993_s1 + $0x294] sm:$0xf0]  ;;  %v3017_v54 = vor.u32 %v4389_v45, %v3016_v44 }
  0x6c   :  { %1441 = vmatpush.bf16.msra.mxu3 %v3193_v23  ;;  %v3400_v51 = vld [vmem:[%s6993_s1 + $0x388] sm:$0xf]  ;;  %v4485_v52 = vld [vmem:[%s6993_s1 + $0x394] sm:$0xf0]  ;;  %v3273_v58 = vor.u32 %v4453_v49, %v3272_v47 }
  0x6d   :  { %1430 = vmatpush.bf16.msrb.mxu1 %v3033_v40  ;;  %v3144_v55 = vld [vmem:[%s6993_s1 + $0x188] sm:$0xf]  ;;  %v4421_v56 = vld [vmem:[%s6993_s1 + $0x194] sm:$0xf0]  ;;  %1456 = vmatpush.bf16.msrb.mxu0 %v3289_v43  ;;  %v3401_v62 = vor.u32 %v4485_v52, %v3400_v51  ;;  %v4399_v51 = vld [vmem:[%s6993_s1 + $0xec] sm:$0xf] }
  0x6e   :  { %v3000_v59 = vld [vmem:[%s6993_s1 + $0x68] sm:$0xf]  ;;  %v4385_v61 = vld [vmem:[%s6993_s1 + $0x74] sm:$0xf0]  ;;  %v3145_v1 = vor.u32 %v4421_v56, %v3144_v55  ;;  %v3066_v52 = vld [vmem:[%s6993_s1 + $0xf8] sm:$0xf0] }
  0x6f   :  { %1468 = vmatpush.bf16.msra.mxu2 %v3433_v32  ;;  %v3256_v63 = vld [vmem:[%s6993_s1 + $0x268] sm:$0xf]  ;;  %v4449_v0 = vld [vmem:[%s6993_s1 + $0x274] sm:$0xf0]  ;;  %v3001_v4 = vor.u32 %v4385_v61, %v3000_v59 }
  0x70   :  { %1442 = vmatpush.bf16.msra.mxu3 %v3177_v36  ;;  %v3384_v2 = vld [vmem:[%s6993_s1 + $0x368] sm:$0xf]  ;;  %v4481_v3 = vld [vmem:[%s6993_s1 + $0x374] sm:$0xf0]  ;;  %v3257_v7 = vor.u32 %v4449_v0, %v3256_v63  ;;  %v4431_v0 = vld [vmem:[%s6993_s1 + $0x1ec] sm:$0xf] }
  0x71   :  { %1431 = vmatpush.bf16.msrb.mxu1 %v3017_v54  ;;  %v3128_v5 = vld [vmem:[%s6993_s1 + $0x168] sm:$0xf]  ;;  %v4417_v6 = vld [vmem:[%s6993_s1 + $0x174] sm:$0xf0]  ;;  %1457 = vmatpush.bf16.msrb.mxu0 %v3273_v58  ;;  %v3385_v11 = vor.u32 %v4481_v3, %v3384_v2  ;;  %v3069_v3 = vor.u32 %v4399_v51, %v3066_v52 }
  0x72   :  { %v2984_v8 = vld [vmem:[%s6993_s1 + $0x48] sm:$0xf]  ;;  %v4381_v10 = vld [vmem:[%s6993_s1 + $0x54] sm:$0xf0]  ;;  %v3129_v14 = vor.u32 %v4417_v6, %v3128_v5  ;;  %v4395_v5 = vld [vmem:[%s6993_s1 + $0xcc] sm:$0xf] }
  0x73   :  { %1469 = vmatpush.bf16.msra.mxu2 %v3417_v46  ;;  %v3240_v12 = vld [vmem:[%s6993_s1 + $0x248] sm:$0xf]  ;;  %v4445_v13 = vld [vmem:[%s6993_s1 + $0x254] sm:$0xf0]  ;;  %v2985_v17 = vor.u32 %v4381_v10, %v2984_v8  ;;  %v3050_v6 = vld [vmem:[%s6993_s1 + $0xd8] sm:$0xf0] }
  0x74   :  { %1443 = vmatpush.bf16.msra.mxu3 %v3161_v50  ;;  %v3368_v15 = vld [vmem:[%s6993_s1 + $0x348] sm:$0xf]  ;;  %v4477_v16 = vld [vmem:[%s6993_s1 + $0x354] sm:$0xf0]  ;;  %v3241_v20 = vor.u32 %v4445_v13, %v3240_v12 }
  0x75   :  { %1432 = vmatpush.bf16.msrb.mxu1 %v3001_v4  ;;  %v3112_v18 = vld [vmem:[%s6993_s1 + $0x148] sm:$0xf]  ;;  %v4413_v19 = vld [vmem:[%s6993_s1 + $0x154] sm:$0xf0]  ;;  %1458 = vmatpush.bf16.msrb.mxu0 %v3257_v7  ;;  %v3369_v23 = vor.u32 %v4477_v16, %v3368_v15  ;;  %v3178_v15 = vld [vmem:[%s6993_s1 + $0x1d8] sm:$0xf0]  ;;  %v3053_v16 = vor.u32 %v4395_v5, %v3050_v6 }
  0x76   :  { %v2968_v21 = vld [vmem:[%s6993_s1 + $0x28] sm:$0xf]  ;;  %v4377_v22 = vld [vmem:[%s6993_s1 + $0x34] sm:$0xf0]  ;;  %v3113_v26 = vor.u32 %v4413_v19, %v3112_v18  ;;  %v4391_v18 = vld [vmem:[%s6993_s1 + $0xac] sm:$0xf] }
  0x77   :  { %1470 = vmatpush.bf16.msra.mxu2 %v3401_v62  ;;  %3727 = vmatmul.msk.bf16.vlgmr.msrb.gmra.mxu3 %vm1242_vm0, %v5152_v48  ;;  %v3224_v24 = vld [vmem:[%s6993_s1 + $0x228] sm:$0xf]  ;;  %v4441_v25 = vld [vmem:[%s6993_s1 + $0x234] sm:$0xf0]  ;;  %v2969_v29 = vor.u32 %v4377_v22, %v2968_v21  ;;  %v3034_v19 = vld [vmem:[%s6993_s1 + $0xb8] sm:$0xf0] }
  0x78   :  { %1444 = vmatpush.bf16.msra.mxu3 %v3145_v1  ;;  %v3352_v27 = vld [vmem:[%s6993_s1 + $0x328] sm:$0xf]  ;;  %v4473_v28 = vld [vmem:[%s6993_s1 + $0x334] sm:$0xf0]  ;;  %v3225_v33 = vor.u32 %v4441_v25, %v3224_v24  ;;  %v3194_v1 = vld [vmem:[%s6993_s1 + $0x1f8] sm:$0xf0] }
  0x79   :  { %1433 = vmatpush.bf16.msrb.mxu1 %v2985_v17  ;;  %v3096_v30 = vld [vmem:[%s6993_s1 + $0x128] sm:$0xf]  ;;  %v4409_v31 = vld [vmem:[%s6993_s1 + $0x134] sm:$0xf0]  ;;  %1459 = vmatpush.bf16.msrb.mxu0 %v3241_v20  ;;  %v3353_v38 = vor.u32 %v4473_v28, %v3352_v27  ;;  %v3197_v8 = vor.u32 %v4431_v0, %v3194_v1  ;;  %v3162_v27 = vld [vmem:[%s6993_s1 + $0x1b8] sm:$0xf0]  ;;  %v3037_v28 = vor.u32 %v4391_v18, %v3034_v19 }
  0x7a   :  { %v2952_v32 = vld [vmem:[%s6993_s1 + $0x8] sm:$0xf]  ;;  %v4373_v35 = vld [vmem:[%s6993_s1 + $0x14] sm:$0xf0]  ;;  %v3097_v44 = vor.u32 %v4409_v31, %v3096_v30  ;;  %v4387_v30 = vld [vmem:[%s6993_s1 + $0x8c] sm:$0xf] }
  0x7b   :  { %1471 = vmatpush.bf16.msra.mxu2 %v3385_v11  ;;  %v3576_v36 = vld [vmem:[%s6993_s1 + $0x4e8] sm:$0xf]  ;;  %v4529_v37 = vld [vmem:[%s6993_s1 + $0x4f4] sm:$0xf0]  ;;  %v2953_v49 = vor.u32 %v4373_v35, %v2952_v32  ;;  %v3018_v31 = vld [vmem:[%s6993_s1 + $0x98] sm:$0xf0] }
  0x7c   :  { %1445 = vmatpush.bf16.msra.mxu3 %v3129_v14  ;;  %v3080_v40 = vld [vmem:[%s6993_s1 + $0x108] sm:$0xf]  ;;  %v4437_v42 = vld [vmem:[%s6993_s1 + $0x214] sm:$0xf0]  ;;  %v3577_v54 = vor.u32 %v4529_v37, %v3576_v36  ;;  %v4427_v14 = vld [vmem:[%s6993_s1 + $0x1cc] sm:$0xf] }
  0x7d   :  { %v3208_v41 = vld [vmem:[%s6993_s1 + $0x208] sm:$0xf]  ;;  %v4469_v45 = vld [vmem:[%s6993_s1 + $0x314] sm:$0xf0]  ;;  %1434 = vmatpush.bf16.msrb.mxu1 %v2969_v29  ;;  %1460 = vmatpush.bf16.msrb.mxu0 %v3225_v33  ;;  %v3181_v21 = vor.u32 %v4427_v14, %v3178_v15  ;;  %v3114_v5 = vld [vmem:[%s6993_s1 + $0x158] sm:$0xf0] }
  0x7e   :  { %v3336_v43 = vld [vmem:[%s6993_s1 + $0x308] sm:$0xf]  ;;  %v4565_v47 = vld [vmem:[%s6993_s1 + $0x614] sm:$0xf0]  ;;  %v3209_v55 = vor.u32 %v4437_v42, %v3208_v41  ;;  %v3146_v41 = vld [vmem:[%s6993_s1 + $0x198] sm:$0xf0]  ;;  %v3021_v42 = vor.u32 %v4387_v30, %v3018_v31 }
  0x7f   :  { %1472 = vmatpush.bf16.msra.mxu2 %v3369_v23  ;;  %v3720_v46 = vld [vmem:[%s6993_s1 + $0x608] sm:$0xf]  ;;  %v4405_v50 = vld [vmem:[%s6993_s1 + $0x114] sm:$0xf0]  ;;  %v3337_v61 = vor.u32 %v4469_v45, %v3336_v43  ;;  %v3002_v45 = vld [vmem:[%s6993_s1 + $0x78] sm:$0xf0] }
  0x80   :  { %1446 = vmatpush.bf16.msra.mxu3 %v3113_v26  ;;  %v3704_v56 = vld [vmem:[%s6993_s1 + $0x5e8] sm:$0xf]  ;;  %v4561_v58 = vld [vmem:[%s6993_s1 + $0x5f4] sm:$0xf0]  ;;  %v3721_v63 = vor.u32 %v4565_v47, %v3720_v46  ;;  %v3081_v2 = vor.u32 %v4405_v50, %v3080_v40  ;;  %v4423_v26 = vld [vmem:[%s6993_s1 + $0x1ac] sm:$0xf] }
  0x81   :  { %v3560_v59 = vld [vmem:[%s6993_s1 + $0x4c8] sm:$0xf]  ;;  %v4525_v62 = vld [vmem:[%s6993_s1 + $0x4d4] sm:$0xf0]  ;;  %1435 = vmatpush.bf16.msrb.mxu1 %v2953_v49  ;;  %v3705_v4 = vor.u32 %v4561_v58, %v3704_v56  ;;  %1461 = vmatpush.bf16.msrb.mxu0 %v3209_v55  ;;  %v3165_v33 = vor.u32 %v4423_v26, %v3162_v27  ;;  %v4419_v40 = vld [vmem:[%s6993_s1 + $0x18c] sm:$0xf] }
  0x82   :  { %v3561_v7 = vor.u32 %v4525_v62, %v3560_v59  ;;  %v3688_v10 = vld [vmem:[%s6993_s1 + $0x5c8] sm:$0xf]  ;;  %v4557_v11 = vld [vmem:[%s6993_s1 + $0x5d4] sm:$0xf0]  ;;  %v3149_v47 = vor.u32 %v4419_v40, %v3146_v41  ;;  %v3130_v55 = vld [vmem:[%s6993_s1 + $0x178] sm:$0xf0] }
  0x83   :  { %1473 = vmatpush.bf16.msra.mxu2 %v3353_v38  ;;  %v3544_v12 = vld [vmem:[%s6993_s1 + $0x4a8] sm:$0xf]  ;;  %v4521_v13 = vld [vmem:[%s6993_s1 + $0x4b4] sm:$0xf0]  ;;  %v3689_v17 = vor.u32 %v4557_v11, %v3688_v10  ;;  %v4379_v59 = vld [vmem:[%s6993_s1 + $0x4c] sm:$0xf] }
  0x84   :  { %1447 = vmatpush.bf16.msra.mxu3 %v3097_v44  ;;  %1462 = vmatmul.bf16.vlgmr.msrb.gmra.mxu0 %v5032_v53  ;;  %v3545_v20 = vor.u32 %v4521_v13, %v3544_v12  ;;  %v3672_v22 = vld [vmem:[%s6993_s1 + $0x5a8] sm:$0xf]  ;;  %v4553_v23 = vld [vmem:[%s6993_s1 + $0x5b4] sm:$0xf0]  ;;  %v4383_v44 = vld [vmem:[%s6993_s1 + $0x6c] sm:$0xf] }
  0x85   :  { %1480 = vmatpush.bf16.msra.mxu1 %v3577_v54  ;;  %1513 = vmatpush.bf16.msra.mxu0 %v3721_v63  ;;  %v3528_v24 = vld [vmem:[%s6993_s1 + $0x488] sm:$0xf]  ;;  %v4517_v25 = vld [vmem:[%s6993_s1 + $0x494] sm:$0xf0]  ;;  %v3673_v29 = vor.u32 %v4553_v23, %v3672_v22  ;;  %v4415_v54 = vld [vmem:[%s6993_s1 + $0x16c] sm:$0xf]  ;;  %v3005_v56 = vor.u32 %v4383_v44, %v3002_v45 }
  0x86   :  { %1436 = vmatmul.bf16.vlgmr.msrb.gmra.mxu1 %v5043_v57  ;;  %v3529_v32 = vor.u32 %v4517_v25, %v3528_v24  ;;  %v3656_v35 = vld [vmem:[%s6993_s1 + $0x588] sm:$0xf]  ;;  %v4549_v36 = vld [vmem:[%s6993_s1 + $0x594] sm:$0xf0]  ;;  %v3133_v63 = vor.u32 %v4415_v54, %v3130_v55  ;;  %v2970_v10 = vld [vmem:[%s6993_s1 + $0x38] sm:$0xf0] }
  0x87   :  { %1474 = vmatpush.bf16.msra.mxu2 %v3337_v61  ;;  %v3512_v37 = vld [vmem:[%s6993_s1 + $0x468] sm:$0xf]  ;;  %v4513_v38 = vld [vmem:[%s6993_s1 + $0x474] sm:$0xf0]  ;;  %v3657_v43 = vor.u32 %v4549_v36, %v3656_v35  ;;  %v2986_v61 = vld [vmem:[%s6993_s1 + $0x58] sm:$0xf0] }
  0x88   :  { %1448 = vmatpush.bf16.msra.mxu3 %v3081_v2  ;;  %v3513_v46 = vor.u32 %v4513_v38, %v3512_v37  ;;  %v3640_v49 = vld [vmem:[%s6993_s1 + $0x568] sm:$0xf]  ;;  %v4545_v50 = vld [vmem:[%s6993_s1 + $0x574] sm:$0xf0]  ;;  %v2989_v6 = vor.u32 %v4379_v59, %v2986_v61  ;;  %v3098_v18 = vld [vmem:[%s6993_s1 + $0x138] sm:$0xf0] }
  0x89   :  { %1481 = vmatpush.bf16.msra.mxu1 %v3561_v7  ;;  %1532 = vmatpush.bf16.msrb.mxu0 %v3197_v8  ;;  %v3496_v51 = vld [vmem:[%s6993_s1 + $0x448] sm:$0xf]  ;;  %v4509_v52 = vld [vmem:[%s6993_s1 + $0x454] sm:$0xf0]  ;;  %v3641_v58 = vor.u32 %v4545_v50, %v3640_v49  ;;  %v4375_v8 = vld [vmem:[%s6993_s1 + $0x2c] sm:$0xf] }
  0x8a   :  { %1475 = vmatmul.bf16.vlgmr.msra.gmra.mxu2 %v5045_v60  ;;  %v3497_v62 = vor.u32 %v4509_v52, %v3496_v51  ;;  %v3624_v0 = vld [vmem:[%s6993_s1 + $0x548] sm:$0xf]  ;;  %v4541_v1 = vld [vmem:[%s6993_s1 + $0x554] sm:$0xf0]  ;;  %v2973_v19 = vor.u32 %v4375_v8, %v2970_v10  ;;  %v4371_v24 = vld [vmem:[%s6993_s1 + $0xc] sm:$0xf] }
  0x8b   :  { %1519 = vmatpush.bf16.msrb.mxu2 %v3069_v3  ;;  %1449 = vmatmul.bf16.vlgmr.msra.gmra.mxu3 %v5073_v9  ;;  %v3480_v2 = vld [vmem:[%s6993_s1 + $0x428] sm:$0xf]  ;;  %v4505_v3 = vld [vmem:[%s6993_s1 + $0x434] sm:$0xf0]  ;;  %v3625_v7 = vor.u32 %v4541_v1, %v3624_v0  ;;  %v2954_v25 = vld [vmem:[%s6993_s1 + $0x18] sm:$0xf0] }
  0x8c   :  { %1493 = vmatpush.bf16.msrb.mxu3 %v3705_v4  ;;  %v4411_v4 = vld [vmem:[%s6993_s1 + $0x14c] sm:$0xf]  ;;  %v3481_v11 = vor.u32 %v4505_v3, %v3480_v2  ;;  %v3608_v13 = vld [vmem:[%s6993_s1 + $0x528] sm:$0xf]  ;;  %v4537_v14 = vld [vmem:[%s6993_s1 + $0x534] sm:$0xf0]  ;;  %v2957_v36 = vor.u32 %v4371_v24, %v2954_v25 }
  0x8d   :  { %1482 = vmatpush.bf16.msra.mxu1 %v3545_v20  ;;  %1533 = vmatpush.bf16.msrb.mxu0 %v3181_v21  ;;  %v3117_v12 = vor.u32 %v4411_v4, %v3114_v5  ;;  %v3464_v15 = vld [vmem:[%s6993_s1 + $0x408] sm:$0xf]  ;;  %v4463_v20 = vld [vmem:[%s6993_s1 + $0x2ec] sm:$0xf]  ;;  %v3322_v21 = vld [vmem:[%s6993_s1 + $0x2f8] sm:$0xf0]  ;;  %v3609_v22 = vor.u32 %v4537_v14, %v3608_v13 }
  0x8e   :  { %v3592_v23 = vld [vmem:[%s6993_s1 + $0x508] sm:$0xf]  ;;  %v3450_v30 = vld [vmem:[%s6993_s1 + $0x3f8] sm:$0xf0]  ;;  %v3325_v31 = vor.u32 %v4463_v20, %v3322_v21  ;;  %v4459_v35 = vld [vmem:[%s6993_s1 + $0x2cc] sm:$0xf] }
  0x8f   :  { %1520 = vmatpush.bf16.msrb.mxu2 %v3053_v16  ;;  %v4501_v16 = vld [vmem:[%s6993_s1 + $0x414] sm:$0xf0]  ;;  %v3306_v37 = vld [vmem:[%s6993_s1 + $0x2d8] sm:$0xf0]  ;;  %v4403_v38 = vld [vmem:[%s6993_s1 + $0x10c] sm:$0xf] }
  0x90   :  { %1494 = vmatpush.bf16.msrb.mxu3 %v3689_v17  ;;  %v4407_v17 = vld [vmem:[%s6993_s1 + $0x12c] sm:$0xf]  ;;  %v3465_v26 = vor.u32 %v4501_v16, %v3464_v15  ;;  %v3082_v40 = vld [vmem:[%s6993_s1 + $0x118] sm:$0xf0] }
  0x91   :  { %1483 = vmatpush.bf16.msra.mxu1 %v3529_v32  ;;  %1534 = vmatpush.bf16.msrb.mxu0 %v3165_v33  ;;  %v3101_v27 = vor.u32 %v4407_v17, %v3098_v18  ;;  %v4527_v32 = vld [vmem:[%s6993_s1 + $0x4ec] sm:$0xf]  ;;  %v3578_v33 = vld [vmem:[%s6993_s1 + $0x4f8] sm:$0xf0]  ;;  %v3085_v49 = vor.u32 %v4403_v38, %v3082_v40 }
  0x92   :  { %v3581_v45 = vor.u32 %v4527_v32, %v3578_v33  ;;  %v3434_v50 = vld [vmem:[%s6993_s1 + $0x3d8] sm:$0xf0]  ;;  %v4523_v51 = vld [vmem:[%s6993_s1 + $0x4cc] sm:$0xf] }
  0x93   :  { %1521 = vmatpush.bf16.msrb.mxu2 %v3037_v28  ;;  %v4533_v28 = vld [vmem:[%s6993_s1 + $0x514] sm:$0xf0]  ;;  %v3562_v52 = vld [vmem:[%s6993_s1 + $0x4d8] sm:$0xf0]  ;;  %v4455_v55 = vld [vmem:[%s6993_s1 + $0x2ac] sm:$0xf] }
  0x94   :  { %1495 = vmatpush.bf16.msrb.mxu3 %v3673_v29  ;;  %3728 = vmatmul.msk.bf16.vlgmr.msra.gmra.mxu0 %vm1242_vm0, %v5152_v48  ;;  %v4495_v29 = vld [vmem:[%s6993_s1 + $0x3ec] sm:$0xf]  ;;  %v3593_v41 = vor.u32 %v4533_v28, %v3592_v23  ;;  %v3690_v59 = vld [vmem:[%s6993_s1 + $0x5d8] sm:$0xf0] }
  0x95   :  { %1484 = vmatpush.bf16.msra.mxu1 %v3513_v46  ;;  %1535 = vmatpush.bf16.msrb.mxu0 %v3149_v47  ;;  %v3453_v44 = vor.u32 %v4495_v29, %v3450_v30  ;;  %v4491_v46 = vld [vmem:[%s6993_s1 + $0x3cc] sm:$0xf]  ;;  %v3309_v47 = vor.u32 %v4459_v35, %v3306_v37  ;;  %v3418_v1 = vld [vmem:[%s6993_s1 + $0x3b8] sm:$0xf0] }
  0x96   :  { %v3437_v61 = vor.u32 %v4491_v46, %v3434_v50  ;;  %v4519_v2 = vld [vmem:[%s6993_s1 + $0x4ac] sm:$0xf]  ;;  %v3546_v3 = vld [vmem:[%s6993_s1 + $0x4b8] sm:$0xf0] }
  0x97   :  { %1522 = vmatpush.bf16.msrb.mxu2 %v3021_v42  ;;  %v4559_v42 = vld [vmem:[%s6993_s1 + $0x5ec] sm:$0xf]  ;;  %v3674_v8 = vld [vmem:[%s6993_s1 + $0x5b8] sm:$0xf0] }
  0x98   :  { %1496 = vmatpush.bf16.msrb.mxu3 %v3657_v43  ;;  %v3706_v43 = vld [vmem:[%s6993_s1 + $0x5f8] sm:$0xf0]  ;;  %v4451_v5 = vld [vmem:[%s6993_s1 + $0x28c] sm:$0xf] }
  0x99   :  { %1485 = vmatpush.bf16.msra.mxu1 %v3497_v62  ;;  %1536 = vmatpush.bf16.msrb.mxu0 %v3133_v63  ;;  %v3709_v54 = vor.u32 %v4559_v42, %v3706_v43  ;;  %v3565_v62 = vor.u32 %v4523_v51, %v3562_v52  ;;  %v4487_v63 = vld [vmem:[%s6993_s1 + $0x3ac] sm:$0xf]  ;;  %v3530_v15 = vld [vmem:[%s6993_s1 + $0x498] sm:$0xf0] }
  0x9a   :  { %v3421_v10 = vor.u32 %v4487_v63, %v3418_v1  ;;  %v4515_v14 = vld [vmem:[%s6993_s1 + $0x48c] sm:$0xf]  ;;  %v3258_v18 = vld [vmem:[%s6993_s1 + $0x278] sm:$0xf0] }
  0x9b   :  { %1523 = vmatpush.bf16.msrb.mxu2 %v3005_v56  ;;  %v3290_v56 = vld [vmem:[%s6993_s1 + $0x2b8] sm:$0xf0]  ;;  %v4447_v17 = vld [vmem:[%s6993_s1 + $0x26c] sm:$0xf] }
  0x9c   :  { %1497 = vmatpush.bf16.msrb.mxu3 %v3641_v58  ;;  %v4555_v58 = vld [vmem:[%s6993_s1 + $0x5cc] sm:$0xf]  ;;  %v3293_v0 = vor.u32 %v4455_v55, %v3290_v56  ;;  %v3261_v24 = vor.u32 %v4447_v17, %v3258_v18  ;;  %v3386_v25 = vld [vmem:[%s6993_s1 + $0x378] sm:$0xf0]  ;;  %v3844_v17 = vld [vmem:[%s6995_s3 + $0xe0] sm:$0xf] }
  0x9d   :  { %1486 = vmatpush.bf16.msra.mxu1 %v3481_v11  ;;  %1537 = vmatpush.bf16.msrb.mxu0 %v3117_v12  ;;  %v3693_v4 = vor.u32 %v4555_v58, %v3690_v59  ;;  %v3549_v11 = vor.u32 %v4519_v2, %v3546_v3  ;;  %v4483_v12 = vld [vmem:[%s6993_s1 + $0x38c] sm:$0xf]  ;;  %v3642_v33 = vld [vmem:[%s6993_s1 + $0x578] sm:$0xf0]  ;;  %v4596_v18 = vld [vmem:[%s6995_s3 + $0xec] sm:$0xf0] }
  0x9e   :  { %v4547_v20 = vld [vmem:[%s6993_s1 + $0x58c] sm:$0xf]  ;;  %v3370_v42 = vld [vmem:[%s6993_s1 + $0x358] sm:$0xf0] }
  0x9f   :  { %1524 = vmatpush.bf16.msrb.mxu2 %v2989_v6  ;;  %v3274_v6 = vld [vmem:[%s6993_s1 + $0x298] sm:$0xf0]  ;;  %v4479_v23 = vld [vmem:[%s6993_s1 + $0x36c] sm:$0xf] }
  0xa0   :  { %1498 = vmatpush.bf16.msrb.mxu3 %v3625_v7  ;;  %v4551_v7 = vld [vmem:[%s6993_s1 + $0x5ac] sm:$0xf]  ;;  %v3277_v13 = vor.u32 %v4451_v5, %v3274_v6  ;;  %v3626_v51 = vld [vmem:[%s6993_s1 + $0x558] sm:$0xf0]  ;;  %v6016_v6 = vld [vmem:[%s6994_s2] sm:$0xf] }
  0xa1   :  { %1487 = vmatpush.bf16.msra.mxu1 %v3465_v26  ;;  %1538 = vmatpush.bf16.msrb.mxu0 %v3101_v27  ;;  %v3677_v16 = vor.u32 %v4551_v7, %v3674_v8  ;;  %v4511_v26 = vld [vmem:[%s6993_s1 + $0x46c] sm:$0xf]  ;;  %v3514_v27 = vld [vmem:[%s6993_s1 + $0x478] sm:$0xf0] }
  0xa2   :  { %v4443_v30 = vld [vmem:[%s6993_s1 + $0x24c] sm:$0xf]  ;;  %v3517_v37 = vor.u32 %v4511_v26, %v3514_v27  ;;  %v3354_v58 = vld [vmem:[%s6993_s1 + $0x338] sm:$0xf0]  ;;  %v3845_v27 = vor.u32 %v4596_v18, %v3844_v17  ;;  %v4568_v17 = vld [vmem:[%s6995_s3 + $0xc] sm:$0xf0] }
  0xa3   :  { %1525 = vmatpush.bf16.msrb.mxu2 %v2973_v19  ;;  %v4543_v32 = vld [vmem:[%s6993_s1 + $0x56c] sm:$0xf]  ;;  %v3610_v3 = vld [vmem:[%s6993_s1 + $0x538] sm:$0xf0] }
  0xa4   :  { %1499 = vmatpush.bf16.msrb.mxu3 %v3609_v22  ;;  %1488 = vmatmul.bf16.vlgmr.msra.gmra.mxu1 %v5240_v34  ;;  %v3533_v22 = vor.u32 %v4515_v14, %v3530_v15  ;;  %v4475_v38 = vld [vmem:[%s6993_s1 + $0x34c] sm:$0xf]  ;;  %v3722_v5 = vld [vmem:[%s6993_s1 + $0x618] sm:$0xf0] }
  0xa5   :  { %1545 = vmatpush.bf16.msrb.mxu1 %v3325_v31  ;;  %1539 = vmatpush.bf16.msrb.mxu0 %v3085_v49  ;;  %v5921_v19 = vpop.f32.mrf.mxu0  ;;  %v5941_v29 = vpop.f32.mrf.mxu1  ;;  %v3242_v31 = vld [vmem:[%s6993_s1 + $0x258] sm:$0xf0]  ;;  %v4507_v43 = vld [vmem:[%s6993_s1 + $0x44c] sm:$0xf]  ;;  %v3373_v52 = vor.u32 %v4475_v38, %v3370_v42  ;;  %v3812_v42 = vld [vmem:[%s6995_s3 + $0xa0] sm:$0xf] }
  0xa6   :  { %v3245_v40 = vor.u32 %v4443_v30, %v3242_v31  ;;  %v4439_v46 = vld [vmem:[%s6993_s1 + $0x22c] sm:$0xf]  ;;  %v3466_v14 = vld [vmem:[%s6993_s1 + $0x418] sm:$0xf0]  ;;  %v3828_v30 = vld [vmem:[%s6995_s3 + $0xc0] sm:$0xf] }
  0xa7   :  { %1526 = vmatpush.bf16.msrb.mxu2 %v2957_v36  ;;  %v3389_v36 = vor.u32 %v4479_v23, %v3386_v25  ;;  %v4539_v50 = vld [vmem:[%s6993_s1 + $0x54c] sm:$0xf]  ;;  %v4628_v23 = vld [vmem:[%s6995_s3 + $0x1ec] sm:$0xf0] }
  0xa8   :  { %1500 = vmatpush.bf16.msrb.mxu3 %v3593_v41  ;;  %1540 = vmatmul.bf16.vlgmr.msrb.gmra.mxu0 %v5073_v9  ;;  %v3658_v9 = vld [vmem:[%s6993_s1 + $0x598] sm:$0xf0]  ;;  %v5955_v35 = vpop.f32.mrf.mxu2  ;;  %v4471_v55 = vld [vmem:[%s6993_s1 + $0x32c] sm:$0xf]  ;;  %v4592_v31 = vld [vmem:[%s6995_s3 + $0xcc] sm:$0xf0] }
  0xa9   :  { %1546 = vmatpush.bf16.msrb.mxu1 %v3309_v47  ;;  %1584 = vmatpush.bf16.msra.mxu0 %v3709_v54  ;;  %v3661_v28 = vor.u32 %v4547_v20, %v3658_v9  ;;  %v5960_v41 = vpop.f32.mrf.mxu3  ;;  %v3226_v47 = vld [vmem:[%s6993_s1 + $0x238] sm:$0xf0]  ;;  %v4503_v59 = vld [vmem:[%s6993_s1 + $0x42c] sm:$0xf]  ;;  %v3357_v8 = vor.u32 %v4471_v55, %v3354_v58  ;;  %v3780_v55 = vld [vmem:[%s6995_s3 + $0x60] sm:$0xf] }
  0xaa   :  { %1527 = vmatmul.bf16.vlgmr.msrb.gmra.mxu2 %v5043_v57  ;;  %v3402_v57 = vld [vmem:[%s6993_s1 + $0x398] sm:$0xf0]  ;;  %v3229_v56 = vor.u32 %v4439_v46, %v3226_v47  ;;  %v4435_v63 = vld [vmem:[%s6993_s1 + $0x20c] sm:$0xf]  ;;  %v4584_v47 = vld [vmem:[%s6995_s3 + $0x8c] sm:$0xf0] }
  0xab   :  { %1571 = vmatpush.bf16.msra.mxu2 %v3581_v45  ;;  %1501 = vmatmul.bf16.vlgmr.msrb.gmra.mxu3 %v5251_v39  ;;  %v3405_v21 = vor.u32 %v4483_v12, %v3402_v57  ;;  %v3645_v45 = vor.u32 %v4543_v32, %v3642_v33  ;;  %v4535_v1 = vld [vmem:[%s6993_s1 + $0x52c] sm:$0xf]  ;;  %v3956_v33 = vld [vmem:[%s6995_s3 + $0x1c0] sm:$0xf] }
  0xac   :  { %1558 = vmatpush.bf16.msra.mxu3 %v3453_v44  ;;  %v3498_v44 = vld [vmem:[%s6993_s1 + $0x458] sm:$0xf0]  ;;  %v4499_v57 = vld [vmem:[%s6993_s1 + $0x40c] sm:$0xf] }
  0xad   :  { %1547 = vmatpush.bf16.msrb.mxu1 %v3293_v0  ;;  %1585 = vmatpush.bf16.msra.mxu0 %v3693_v4  ;;  %v1257_v49 = vpop.f32.mrf.mxu0  ;;  %v3501_v54 = vor.u32 %v4507_v43, %v3498_v44  ;;  %v3210_v0 = vld [vmem:[%s6993_s1 + $0x218] sm:$0xf0]  ;;  %v1270_v2 = vpop.f32.mrf.mxu1  ;;  %v4563_v4 = vld [vmem:[%s6993_s1 + $0x60c] sm:$0xf]  ;;  %v3469_v26 = vor.u32 %v4499_v57, %v3466_v14  ;;  %v4588_v43 = vld [vmem:[%s6995_s3 + $0xac] sm:$0xf0] }
  0xae   :  { %v3213_v12 = vor.u32 %v4435_v63, %v3210_v0  ;;  %v4531_v20 = vld [vmem:[%s6993_s1 + $0x50c] sm:$0xf]  ;;  %v3725_v9 = vor.u32 %v4563_v4, %v3722_v5  ;;  %v3813_v46 = vor.u32 %v4588_v43, %v3812_v42  ;;  %v3764_v0 = vld [vmem:[%s6995_s3 + $0x40] sm:$0xf]  ;;  %v4604_v14 = vld [vmem:[%s6995_s3 + $0x12c] sm:$0xf0] }
  0xaf   :  { %1572 = vmatpush.bf16.msra.mxu2 %v3565_v62  ;;  %v3629_v62 = vor.u32 %v4539_v50, %v3626_v51  ;;  %v3892_v4 = vld [vmem:[%s6995_s3 + $0x140] sm:$0xf]  ;;  %v4590_v42 = vld [vmem:[%s6995_s3 + $0xc4] sm:$0xf]  ;;  %v3830_v43 = vld [vmem:[%s6995_s3 + $0xd0] sm:$0xf0] }
  0xb0   :  { %1559 = vmatpush.bf16.msra.mxu3 %v3437_v61  ;;  %v3482_v61 = vld [vmem:[%s6993_s1 + $0x438] sm:$0xf0]  ;;  %v1283_v7 = vpop.f32.mrf.mxu2 }
  0xb1   :  { %1548 = vmatpush.bf16.msrb.mxu1 %v3277_v13  ;;  %1586 = vmatpush.bf16.msra.mxu0 %v3677_v16  ;;  %v3338_v13 = vld [vmem:[%s6993_s1 + $0x318] sm:$0xf0]  ;;  %v1296_v15 = vpop.f32.mrf.mxu3  ;;  %v3613_v16 = vor.u32 %v4535_v1, %v3610_v3  ;;  %v4576_v1 = vld [vmem:[%s6995_s3 + $0x4c] sm:$0xf0] }
  0xb3   :  { %1573 = vmatpush.bf16.msra.mxu2 %v3549_v11  ;;  %v4467_v11 = vld [vmem:[%s6993_s1 + $0x30c] sm:$0xf] }
  0xb4   :  { %1560 = vmatpush.bf16.msra.mxu3 %v3421_v10  ;;  %v3485_v10 = vor.u32 %v4503_v59, %v3482_v61  ;;  %v3341_v25 = vor.u32 %v4467_v11, %v3338_v13  ;;  %v3908_v59 = vld [vmem:[%s6995_s3 + $0x160] sm:$0xf]  ;;  %v4572_v13 = vld [vmem:[%s6995_s3 + $0x2c] sm:$0xf0] }
  0xb5   :  { %1549 = vmatpush.bf16.msrb.mxu1 %v3261_v24  ;;  %1587 = vmatpush.bf16.msra.mxu0 %v3661_v28  ;;  %v230_v24 = vperm.slane %v6016_v6, 0 }
  0xb7   :  { %1574 = vmatpush.bf16.msra.mxu2 %v3533_v22  ;;  %v3972_v22 = vld [vmem:[%s6995_s3 + $0x1e0] sm:$0xf] }
  0xb8   :  { %1561 = vmatpush.bf16.msra.mxu3 %v3405_v21  ;;  %v3594_v21 = vld [vmem:[%s6993_s1 + $0x518] sm:$0xf0]  ;;  %v3973_v32 = vor.u32 %v4628_v23, %v3972_v22  ;;  %v4660_v22 = vld [vmem:[%s6995_s3 + $0x2ec] sm:$0xf0] }
  0xb9   :  { %1550 = vmatpush.bf16.msrb.mxu1 %v3245_v40  ;;  %1588 = vmatpush.bf16.msra.mxu0 %v3645_v45  ;;  %v3597_v28 = vor.u32 %v4531_v20, %v3594_v21  ;;  %v6063_v38 = vpop.f32.mrf.mxu2  ;;  %v3829_v40 = vor.u32 %v4592_v31, %v3828_v30  ;;  %v4594_v20 = vld [vmem:[%s6995_s3 + $0xe4] sm:$0xf]  ;;  %v4100_v21 = vld [vmem:[%s6995_s3 + $0x2e0] sm:$0xf]  ;;  %v3974_v30 = vld [vmem:[%s6995_s3 + $0x1f0] sm:$0xf0] }
  0xbb   :  { %1575 = vmatpush.bf16.msra.mxu2 %v3517_v37  ;;  %v1256_v37 = vadd.f32 %v5921_v19, %v230_v24  ;;  %v4620_v19 = vld [vmem:[%s6995_s3 + $0x1ac] sm:$0xf0]  ;;  %v3846_v24 = vld [vmem:[%s6995_s3 + $0xf0] sm:$0xf0] }
  0xbc   :  { %1562 = vmatpush.bf16.msra.mxu3 %v3389_v36  ;;  %v4624_v36 = vld [vmem:[%s6995_s3 + $0x1cc] sm:$0xf0] }
  0xbd   :  { %1551 = vmatpush.bf16.msrb.mxu1 %v3229_v56  ;;  %1589 = vmatpush.bf16.msra.mxu0 %v3629_v62  ;;  %v3957_v44 = vor.u32 %v4624_v36, %v3956_v33  ;;  %v1269_v45 = vadd.f32 %v5941_v29, %v1256_v37  ;;  %v3924_v29 = vld [vmem:[%s6995_s3 + $0x180] sm:$0xf]  ;;  %v4580_v56 = vld [vmem:[%s6995_s3 + $0x6c] sm:$0xf0]  ;;  %v3849_v36 = vor.u32 %v4594_v20, %v3846_v24 }
  0xbe   :  { %v3781_v62 = vor.u32 %v4580_v56, %v3780_v55  ;;  %v4052_v55 = vld [vmem:[%s6995_s3 + $0x280] sm:$0xf]  ;;  %v4648_v56 = vld [vmem:[%s6995_s3 + $0x28c] sm:$0xf0] }
  0xbf   :  { %1576 = vmatpush.bf16.msra.mxu2 %v3501_v54 }
  0xc0   :  { %1563 = vmatpush.bf16.msra.mxu3 %v3373_v52 }
  0xc1   :  { %1552 = vmatpush.bf16.msrb.mxu1 %v3213_v12  ;;  %1590 = vmatpush.bf16.msra.mxu0 %v3613_v16  ;;  %v1307_v50 = vpop.f32.mrf.mxu0  ;;  %v1320_v51 = vpop.f32.mrf.mxu1  ;;  %v3748_v12 = vld [vmem:[%s6995_s3 + $0x20] sm:$0xf] }
  0xc2   :  { %v1335_v52 = vpop.f32.mrf.mxu2  ;;  %v3749_v15 = vor.u32 %v4572_v13, %v3748_v12  ;;  %v3732_v16 = vld [vmem:[%s6995_s3] sm:$0xf]  ;;  %v4610_v13 = vld [vmem:[%s6995_s3 + $0x164] sm:$0xf] }
  0xc3   :  { %1577 = vmatpush.bf16.msra.mxu2 %v3485_v10  ;;  %v3733_v31 = vor.u32 %v4568_v17, %v3732_v16  ;;  %v3942_v52 = vld [vmem:[%s6995_s3 + $0x1b0] sm:$0xf0]  ;;  %v4574_v17 = vld [vmem:[%s6995_s3 + $0x44] sm:$0xf] }
  0xc4   :  { %1564 = vmatpush.bf16.msra.mxu3 %v3357_v8  ;;  %1553 = vmatmul.bf16.vlgmr.msrb.gmra.mxu1 %v5032_v53  ;;  %v3940_v53 = vld [vmem:[%s6995_s3 + $0x1a0] sm:$0xf]  ;;  %v3765_v8 = vor.u32 %v4576_v1, %v3764_v0 }
  0xc5   :  { %1604 = vmatpush.bf16.msra.mxu1 %v3725_v9  ;;  %1591 = vmatpush.bf16.msra.mxu0 %v3597_v28  ;;  %v3941_v49 = vor.u32 %v4620_v19, %v3940_v53  ;;  %v4626_v28 = vld [vmem:[%s6995_s3 + $0x1e4] sm:$0xf] }
  0xc6   :  { %v4622_v19 = vld [vmem:[%s6995_s3 + $0x1c4] sm:$0xf] }
  0xc7   :  { %1578 = vmatpush.bf16.msra.mxu2 %v3469_v26  ;;  %v4600_v26 = vld [vmem:[%s6995_s3 + $0x10c] sm:$0xf0] }
  0xc8   :  { %1565 = vmatpush.bf16.msra.mxu3 %v3341_v25  ;;  %1592 = vmatmul.bf16.vlgmr.msra.gmra.mxu0 %v5251_v39  ;;  %v1282_v39 = vadd.f32 %v5955_v35, %v1269_v45  ;;  %v4612_v35 = vld [vmem:[%s6995_s3 + $0x16c] sm:$0xf0]  ;;  %v3860_v25 = vld [vmem:[%s6995_s3 + $0x100] sm:$0xf]  ;;  %v3958_v45 = vld [vmem:[%s6995_s3 + $0x1d0] sm:$0xf0] }
  0xc9   :  { %2409 = vmatpush.bf16.msrb.mxu1 %v3973_v32  ;;  %v3909_v2 = vor.u32 %v4612_v35, %v3908_v59  ;;  %v6113_v3 = vpop.f32.mrf.mxu3  ;;  %v1309_v5 = vpop.f32.mrf.mxu0  ;;  %v3861_v37 = vor.u32 %v4600_v26, %v3860_v25  ;;  %v3798_v59 = vld [vmem:[%s6995_s3 + $0x90] sm:$0xf0]  ;;  %v4004_v26 = vld [vmem:[%s6995_s3 + $0x220] sm:$0xf] }
  0xca   :  { %1579 = vmatmul.bf16.vlgmr.msra.gmra.mxu2 %v5240_v34  ;;  %v4616_v34 = vld [vmem:[%s6995_s3 + $0x18c] sm:$0xf0]  ;;  %v1295_v61 = vadd.f32 %v5960_v41, %v1282_v39  ;;  %v1322_v7 = vpop.f32.mrf.mxu1 }
  0xcb   :  { %1566 = vmatmul.bf16.vlgmr.msra.gmra.mxu3 %v5045_v60  ;;  %v3796_v60 = vld [vmem:[%s6995_s3 + $0x80] sm:$0xf]  ;;  %v3925_v58 = vor.u32 %v4616_v34, %v3924_v29  ;;  %v4608_v41 = vld [vmem:[%s6995_s3 + $0x14c] sm:$0xf0]  ;;  %v3814_v29 = vld [vmem:[%s6995_s3 + $0xb0] sm:$0xf0]  ;;  %v3961_v34 = vor.u32 %v4622_v19, %v3958_v45 }
  0xcc   :  { %2396 = vmatpush.bf16.msrb.mxu3 %v3845_v27  ;;  %v3797_v54 = vor.u32 %v4584_v47, %v3796_v60  ;;  %v1308_v63 = vadd.f32 %v1307_v50, %v1295_v61  ;;  %v3893_v57 = vor.u32 %v4608_v41, %v3892_v4  ;;  %v4101_v27 = vor.u32 %v4660_v22, %v4100_v21  ;;  %v4068_v47 = vld [vmem:[%s6995_s3 + $0x2a0] sm:$0xf]  ;;  %v4586_v50 = vld [vmem:[%s6995_s3 + $0xa4] sm:$0xf]  ;;  %v4644_v4 = vld [vmem:[%s6995_s3 + $0x26c] sm:$0xf0] }
  0xcd   :  { %2410 = vmatpush.bf16.msrb.mxu1 %v3957_v44  ;;  %v6123_v10 = vpop.f32.mrf.mxu2  ;;  %v3977_v44 = vor.u32 %v4626_v28, %v3974_v30  ;;  %v3833_v60 = vor.u32 %v4590_v42, %v3830_v43  ;;  %v4053_v61 = vor.u32 %v4648_v56, %v4052_v55  ;;  %v231_v41 = vperm.slane %v6016_v6, 1  ;;  %v4578_v7 = vld [vmem:[%s6995_s3 + $0x64] sm:$0xf]  ;;  %v3734_v43 = vld [vmem:[%s6995_s3 + $0x10] sm:$0xf0] }
  0xce   :  { %v1321_v11 = vadd.f32 %v1320_v51, %v1308_v63  ;;  %2422 = vmatpush.bf16.msrb.mxu2 %v4101_v27  ;;  %v4618_v51 = vld [vmem:[%s6995_s3 + $0x1a4] sm:$0xf]  ;;  %v3926_v63 = vld [vmem:[%s6995_s3 + $0x190] sm:$0xf0]  ;;  %v4636_v27 = vld [vmem:[%s6995_s3 + $0x22c] sm:$0xf0] }
  0xcf   :  { %v3945_v35 = vor.u32 %v4618_v51, %v3942_v52  ;;  %v1347_v16 = vadd.f32 %v6113_v3, %v231_v41  ;;  %v4606_v22 = vld [vmem:[%s6995_s3 + $0x144] sm:$0xf]  ;;  %v3894_v3 = vld [vmem:[%s6995_s3 + $0x150] sm:$0xf0]  ;;  %v3852_v19 = vld [vmem:[%s6995_s3 + $0xe8] sm:$0xf] }
  0xd0   :  { %2397 = vmatpush.bf16.msrb.mxu3 %v3829_v40  ;;  %v1334_v18 = vadd.f32 %v6063_v38, %v1321_v11  ;;  %v4084_v38 = vld [vmem:[%s6995_s3 + $0x2c0] sm:$0xf]  ;;  %v4656_v40 = vld [vmem:[%s6995_s3 + $0x2cc] sm:$0xf0]  ;;  %v4570_v30 = vld [vmem:[%s6995_s3 + $0x24] sm:$0xf] }
  0xd1   :  { %2411 = vmatpush.bf16.msrb.mxu1 %v3941_v49  ;;  %v1348_v23 = vpop.f32.mrf.mxu3  ;;  %v4085_v53 = vor.u32 %v4656_v40, %v4084_v38  ;;  %v4652_v49 = vld [vmem:[%s6995_s3 + $0x2ac] sm:$0xf0]  ;;  %v1360_v28 = vadd.f32 %v6123_v10, %v1347_v16  ;;  %v3878_v10 = vld [vmem:[%s6995_s3 + $0x130] sm:$0xf0]  ;;  %v4566_v40 = vld [vmem:[%s6995_s3 + $0x4] sm:$0xf] }
  0xd2   :  { %v1610_v33 = vmax.f32 %v1334_v18, 0.0  ;;  %v4069_v39 = vor.u32 %v4652_v49, %v4068_v47  ;;  %v3766_v18 = vld [vmem:[%s6995_s3 + $0x50] sm:$0xf0]  ;;  %v4658_v47 = vld [vmem:[%s6995_s3 + $0x2e4] sm:$0xf] }
  0xd3   :  { %2423 = vmatpush.bf16.msrb.mxu2 %v4085_v53  ;;  %v3769_v25 = vor.u32 %v4574_v17, %v3766_v18  ;;  %v4632_v53 = vld [vmem:[%s6995_s3 + $0x20c] sm:$0xf0]  ;;  %v4102_v49 = vld [vmem:[%s6995_s3 + $0x2f0] sm:$0xf0]  ;;  %v3980_v16 = vld [vmem:[%s6995_s3 + $0x1e8] sm:$0xf] }
  0xd4   :  { %2398 = vmatpush.bf16.msrb.mxu3 %v3813_v46  ;;  %3729 = vmatmul.msk.bf16.vlgmr.msra.gmra.mxu1 %vm1242_vm0, %v5152_v48  ;;  %v3876_v48 = vld [vmem:[%s6995_s3 + $0x120] sm:$0xf]  ;;  %v6186_v46 = vpack.c.bf16 %v1610_v33, %v1610_v33  ;;  %v4105_v51 = vor.u32 %v4658_v47, %v4102_v49  ;;  %v4629_v17 = vld [vmem:[%s6995_s3 + $0x1f4] sm:$0xf0] }
  0xd5   :  { %2412 = vmatpush.bf16.msrb.mxu1 %v3925_v58  ;;  %v3877_v9 = vor.u32 %v4604_v14, %v3876_v48  ;;  %v1361_v32 = vpop.f32.mrf.mxu2  ;;  %v4582_v58 = vld [vmem:[%s6995_s3 + $0x84] sm:$0xf]  ;;  %v4020_v14 = vld [vmem:[%s6995_s3 + $0x240] sm:$0xf] }
  0xd6   :  { %v3801_v1 = vor.u32 %v4582_v58, %v3798_v59  ;;  %v3897_v32 = vor.u32 %v4606_v22, %v3894_v3  ;;  %v3836_v59 = vld [vmem:[%s6995_s3 + $0xc8] sm:$0xf]  ;;  %v4585_v22 = vld [vmem:[%s6995_s3 + $0x94] sm:$0xf0]  ;;  %v4646_v3 = vld [vmem:[%s6995_s3 + $0x284] sm:$0xf] }
  0xd7   :  { %2424 = vmatpush.bf16.msrb.mxu2 %v4069_v39  ;;  %v3862_v39 = vld [vmem:[%s6995_s3 + $0x110] sm:$0xf0] }
  0xd8   :  { %2399 = vmatpush.bf16.msrb.mxu3 %v3797_v54  ;;  %v3817_v54 = vor.u32 %v4586_v50, %v3814_v29  ;;  %v4597_v29 = vld [vmem:[%s6995_s3 + $0xf4] sm:$0xf0] }
  0xd9   :  { %2413 = vmatpush.bf16.msrb.mxu1 %v3909_v2  ;;  %v4036_v2 = vld [vmem:[%s6995_s3 + $0x260] sm:$0xf]  ;;  %v3853_v58 = vor.u32 %v4597_v29, %v3852_v19  ;;  %v4680_v19 = vld [vmem:[%s6995_s3 + $0x38c] sm:$0xf0]  ;;  %v3772_v29 = vld [vmem:[%s6995_s3 + $0x48] sm:$0xf] }
  0xda   :  { %v4037_v12 = vor.u32 %v4644_v4, %v4036_v2  ;;  %v4692_v2 = vld [vmem:[%s6995_s3 + $0x3ec] sm:$0xf0] }
  0xdb   :  { %2425 = vmatpush.bf16.msrb.mxu2 %v4053_v61  ;;  %v4654_v61 = vld [vmem:[%s6995_s3 + $0x2c4] sm:$0xf] }
  0xdc   :  { %2400 = vmatpush.bf16.msrb.mxu3 %v3781_v62  ;;  %v4614_v62 = vld [vmem:[%s6995_s3 + $0x184] sm:$0xf] }
  0xdd   :  { %2414 = vmatpush.bf16.msrb.mxu1 %v3893_v57  ;;  %v3929_v11 = vor.u32 %v4614_v62, %v3926_v63  ;;  %v3910_v57 = vld [vmem:[%s6995_s3 + $0x170] sm:$0xf0]  ;;  %v4593_v63 = vld [vmem:[%s6995_s3 + $0xd4] sm:$0xf0] }
  0xde   :  { %v3913_v20 = vor.u32 %v4610_v13, %v3910_v57  ;;  %v4086_v62 = vld [vmem:[%s6995_s3 + $0x2d0] sm:$0xf0]  ;;  %v4589_v13 = vld [vmem:[%s6995_s3 + $0xb4] sm:$0xf0] }
  0xdf   :  { %2426 = vmatpush.bf16.msrb.mxu2 %v4037_v12 }
  0xe0   :  { %2401 = vmatpush.bf16.msrb.mxu3 %v3765_v8  ;;  %v3782_v8 = vld [vmem:[%s6995_s3 + $0x70] sm:$0xf0] }
  0xe1   :  { %2415 = vmatpush.bf16.msrb.mxu1 %v3877_v9  ;;  %v1372_v0 = vpop.f32.mrf.mxu0  ;;  %v3785_v48 = vor.u32 %v4578_v7, %v3782_v8  ;;  %v3820_v7 = vld [vmem:[%s6995_s3 + $0xa8] sm:$0xf]  ;;  %v4650_v8 = vld [vmem:[%s6995_s3 + $0x2a4] sm:$0xf] }
  0xe2   :  { %v1373_v38 = vadd.f32 %v1372_v0, %v1360_v28  ;;  %v4089_v0 = vor.u32 %v4654_v61, %v4086_v62  ;;  %v3964_v28 = vld [vmem:[%s6995_s3 + $0x1c8] sm:$0xf] }
  0xe3   :  { %v1385_v5 = vpop.f32.mrf.mxu1  ;;  %v3756_v62 = vld [vmem:[%s6995_s3 + $0x28] sm:$0xf] }
  0xe4   :  { %2402 = vmatpush.bf16.msrb.mxu3 %v3749_v15  ;;  %v4640_v15 = vld [vmem:[%s6995_s3 + $0x24c] sm:$0xf0]  ;;  %v1386_v52 = vadd.f32 %v1385_v5, %v1373_v38  ;;  %v3837_v5 = vor.u32 %v4593_v63, %v3836_v59  ;;  %v4617_v59 = vld [vmem:[%s6995_s3 + $0x194] sm:$0xf0]  ;;  %v4634_v63 = vld [vmem:[%s6995_s3 + $0x224] sm:$0xf] }
  0xe5   :  { %2416 = vmatpush.bf16.msrb.mxu1 %v3861_v37  ;;  %v4021_v9 = vor.u32 %v4640_v15, %v4020_v14  ;;  %v4602_v37 = vld [vmem:[%s6995_s3 + $0x124] sm:$0xf]  ;;  %v4688_v14 = vld [vmem:[%s6995_s3 + $0x3cc] sm:$0xf0] }
  0xe6   :  { %v3881_v45 = vor.u32 %v4602_v37, %v3878_v10  ;;  %v4642_v37 = vld [vmem:[%s6995_s3 + $0x264] sm:$0xf]  ;;  %v4038_v10 = vld [vmem:[%s6995_s3 + $0x270] sm:$0xf0] }
  0xe7   :  { %2427 = vmatpush.bf16.msrb.mxu2 %v4021_v9 }
  0xe8   :  { %2403 = vmatpush.bf16.msrb.mxu3 %v3733_v31  ;;  %v3750_v31 = vld [vmem:[%s6995_s3 + $0x30] sm:$0xf0] }
  0xe9   :  { %2461 = vmatpush.bf16.msra.mxu1 %v3977_v44  ;;  %v1374_v23 = vpop.f32.mrf.mxu0  ;;  %v3753_v42 = vor.u32 %v4570_v30, %v3750_v31  ;;  %v3988_v44 = vld [vmem:[%s6995_s3 + $0x200] sm:$0xf]  ;;  %v4625_v30 = vld [vmem:[%s6995_s3 + $0x1d4] sm:$0xf0] }
  0xea   :  { %v1398_v21 = vpop.f32.mrf.mxu3  ;;  %v3981_v23 = vor.u32 %v4629_v17, %v3980_v16  ;;  %v4569_v16 = vld [vmem:[%s6995_s3 + $0x14] sm:$0xf0]  ;;  %v4630_v17 = vld [vmem:[%s6995_s3 + $0x204] sm:$0xf] }
  0xeb   :  { %2404 = vmatmul.bf16.vlgmr.msrb.gmra.mxu3 %v6186_v46  ;;  %v1387_v33 = vpop.f32.mrf.mxu1  ;;  %v1399_v56 = vadd.f32 %v1398_v21, %v1386_v52  ;;  %v3821_v21 = vor.u32 %v4589_v13, %v3820_v7  ;;  %v4577_v52 = vld [vmem:[%s6995_s3 + $0x54] sm:$0xf0]  ;;  %v4148_v7 = vld [vmem:[%s6995_s3 + $0x340] sm:$0xf] }
  0xec   :  { %2448 = vmatpush.bf16.msra.mxu3 %v3849_v36  ;;  %v4005_v36 = vor.u32 %v4636_v27, %v4004_v26  ;;  %v4684_v26 = vld [vmem:[%s6995_s3 + $0x3ac] sm:$0xf0]  ;;  %v3773_v61 = vor.u32 %v4577_v52, %v3772_v29  ;;  %v3822_v52 = vld [vmem:[%s6995_s3 + $0xb8] sm:$0xf0] }
  0xed   :  { %2462 = vmatpush.bf16.msra.mxu1 %v3961_v34  ;;  %v1411_v24 = vpop.f32.mrf.mxu2  ;;  %v4598_v34 = vld [vmem:[%s6995_s3 + $0x104] sm:$0xf] }
  0xee   :  { %2428 = vmatpush.bf16.msrb.mxu2 %v4005_v36  ;;  %v1412_v41 = vadd.f32 %v1411_v24, %v1399_v56  ;;  %v4054_v24 = vld [vmem:[%s6995_s3 + $0x290] sm:$0xf0]  ;;  %v3788_v36 = vld [vmem:[%s6995_s3 + $0x68] sm:$0xf]  ;;  %v4676_v56 = vld [vmem:[%s6995_s3 + $0x36c] sm:$0xf0] }
  0xef   :  { %v4057_v31 = vor.u32 %v4646_v3, %v4054_v24  ;;  %v4668_v3 = vld [vmem:[%s6995_s3 + $0x32c] sm:$0xf0]  ;;  %v4595_v24 = vld [vmem:[%s6995_s3 + $0xec] sm:$0xf] }
  0xf0   :  { %2449 = vmatpush.bf16.msra.mxu3 %v3833_v60  ;;  %v3989_v60 = vor.u32 %v4632_v53, %v3988_v44  ;;  %v4041_v44 = vor.u32 %v4642_v37, %v4038_v10  ;;  %v4180_v53 = vld [vmem:[%s6995_s3 + $0x380] sm:$0xf] }
  0xf1   :  { %2463 = vmatpush.bf16.msra.mxu1 %v3945_v35  ;;  %v3865_v35 = vor.u32 %v4598_v34, %v3862_v39  ;;  %v4181_v47 = vor.u32 %v4680_v19, %v4180_v53  ;;  %v4638_v34 = vld [vmem:[%s6995_s3 + $0x244] sm:$0xf]  ;;  %v4022_v39 = vld [vmem:[%s6995_s3 + $0x250] sm:$0xf0] }
  0xf2   :  { %v1400_v50 = vpop.f32.mrf.mxu3  ;;  %2429 = vmatpush.bf16.msrb.mxu2 %v3989_v60  ;;  %v4621_v60 = vld [vmem:[%s6995_s3 + $0x1b4] sm:$0xf0]  ;;  %v4690_v53 = vld [vmem:[%s6995_s3 + $0x3e4] sm:$0xf]  ;;  %v4230_v19 = vld [vmem:[%s6995_s3 + $0x3f0] sm:$0xf0] }
  0xf4   :  { %2450 = vmatpush.bf16.msra.mxu3 %v3817_v54  ;;  %v3737_v54 = vor.u32 %v4566_v40, %v3734_v43  ;;  %v4581_v43 = vld [vmem:[%s6995_s3 + $0x74] sm:$0xf0] }
  0xf5   :  { %2464 = vmatpush.bf16.msra.mxu1 %v3929_v11  ;;  %v1413_v55 = vpop.f32.mrf.mxu2  ;;  %v4070_v11 = vld [vmem:[%s6995_s3 + $0x2b0] sm:$0xf0]  ;;  %v3789_v50 = vor.u32 %v4581_v43, %v3788_v36  ;;  %v4591_v36 = vld [vmem:[%s6995_s3 + $0xcc] sm:$0xf]  ;;  %v3838_v43 = vld [vmem:[%s6995_s3 + $0xd8] sm:$0xf0] }
  0xf6   :  { %2474 = vmatpush.bf16.msra.mxu2 %v4105_v51  ;;  %v4073_v57 = vor.u32 %v4650_v8, %v4070_v11  ;;  %v4164_v55 = vld [vmem:[%s6995_s3 + $0x360] sm:$0xf]  ;;  %v4672_v8 = vld [vmem:[%s6995_s3 + $0x34c] sm:$0xf0]  ;;  %v3916_v11 = vld [vmem:[%s6995_s3 + $0x168] sm:$0xf]  ;;  %v3841_v29 = vor.u32 %v4591_v36, %v3838_v43 }
  0xf7   :  { %v4149_v13 = vor.u32 %v4672_v8, %v4148_v7  ;;  %v4623_v7 = vld [vmem:[%s6995_s3 + $0x1cc] sm:$0xf]  ;;  %v3966_v8 = vld [vmem:[%s6995_s3 + $0x1d8] sm:$0xf0]  ;;  %v4670_v43 = vld [vmem:[%s6995_s3 + $0x344] sm:$0xf] }
  0xf8   :  { %2451 = vmatpush.bf16.msra.mxu3 %v3801_v1  ;;  %v4228_v1 = vld [vmem:[%s6995_s3 + $0x3e0] sm:$0xf] }
  0xf9   :  { %2465 = vmatpush.bf16.msra.mxu1 %v3913_v20  ;;  %v4229_v4 = vor.u32 %v4692_v2, %v4228_v1  ;;  %v3804_v20 = vld [vmem:[%s6995_s3 + $0x88] sm:$0xf] }
  0xfa   :  { %2475 = vmatpush.bf16.msra.mxu2 %v4089_v0  ;;  %v1424_v12 = vpop.f32.mrf.mxu3  ;;  %v3805_v33 = vor.u32 %v4585_v22, %v3804_v20  ;;  %v4006_v0 = vld [vmem:[%s6995_s3 + $0x230] sm:$0xf0]  ;;  %v4132_v22 = vld [vmem:[%s6995_s3 + $0x320] sm:$0xf] }
  0xfb   :  { %2435 = vmatpush.bf16.msrb.mxu0 %v4229_v4  ;;  %v1425_v15 = vadd.f32 %v1424_v12, %v1412_v41  ;;  %v4573_v41 = vld [vmem:[%s6995_s3 + $0x34] sm:$0xf0] }
  0xfc   :  { %2452 = vmatpush.bf16.msra.mxu3 %v3785_v48  ;;  %v4212_v48 = vld [vmem:[%s6995_s3 + $0x3c0] sm:$0xf]  ;;  %v4613_v12 = vld [vmem:[%s6995_s3 + $0x174] sm:$0xf0] }
  0xfd   :  { %2466 = vmatpush.bf16.msra.mxu1 %v3897_v32  ;;  %v4213_v18 = vor.u32 %v4688_v14, %v4212_v48  ;;  %v1611_v9 = vmax.f32 %v1425_v15, 0.0  ;;  %v3740_v48 = vld [vmem:[%s6995_s3 + $0x8] sm:$0xf]  ;;  %v3757_v15 = vor.u32 %v4573_v41, %v3756_v62  ;;  %v3917_v20 = vor.u32 %v4613_v12, %v3916_v11  ;;  %v4198_v41 = vld [vmem:[%s6995_s3 + $0x3b0] sm:$0xf0] }
  0xfe   :  { %2476 = vmatpush.bf16.msra.mxu2 %v4073_v57 }
  0xff   :  { %2436 = vmatpush.bf16.msrb.mxu0 %v4213_v18  ;;  %v6373_v27 = vpack.c.bf16 %v1611_v9, %v1611_v9  ;;  %v3990_v18 = vld [vmem:[%s6995_s3 + $0x210] sm:$0xf0]  ;;  %v3900_v9 = vld [vmem:[%s6995_s3 + $0x148] sm:$0xf] }
 0x100   :  { %2453 = vmatpush.bf16.msra.mxu3 %v3769_v25  ;;  %v4196_v25 = vld [vmem:[%s6995_s3 + $0x3a0] sm:$0xf] }
 0x101   :  { %2467 = vmatpush.bf16.msra.mxu1 %v3881_v45  ;;  %v4197_v32 = vor.u32 %v4684_v26, %v4196_v25  ;;  %v6391_v40 = vpop.f32.mrf.mxu0  ;;  %v3948_v45 = vld [vmem:[%s6995_s3 + $0x1a8] sm:$0xf]  ;;  %v3854_v25 = vld [vmem:[%s6995_s3 + $0xf8] sm:$0xf0]  ;;  %v4133_v26 = vor.u32 %v4668_v3, %v4132_v22  ;;  %v4575_v22 = vld [vmem:[%s6995_s3 + $0x4c] sm:$0xf] }
 0x102   :  { %2417 = vmatmul.bf16.vlgmr.msrb.gmra.mxu1 %v6373_v27  ;;  %v1426_v38 = vpop.f32.mrf.mxu3  ;;  %2477 = vmatpush.bf16.msra.mxu2 %v4057_v31  ;;  %v3949_v51 = vor.u32 %v4621_v60, %v3948_v45  ;;  %v4605_v31 = vld [vmem:[%s6995_s3 + $0x134] sm:$0xf0]  ;;  %v232_v45 = vperm.slane %v6016_v6, 2  ;;  %v3774_v3 = vld [vmem:[%s6995_s3 + $0x58] sm:$0xf0] }
 0x103   :  { %2437 = vmatpush.bf16.msrb.mxu0 %v4197_v32  ;;  %v6408_v49 = vpop.f32.mrf.mxu1  ;;  %v4116_v38 = vld [vmem:[%s6995_s3 + $0x300] sm:$0xf] }
 0x104   :  { %2454 = vmatpush.bf16.msra.mxu3 %v3753_v42  ;;  %v3965_v42 = vor.u32 %v4625_v30, %v3964_v28  ;;  %v3741_v28 = vor.u32 %v4569_v16, %v3740_v48  ;;  %v3884_v30 = vld [vmem:[%s6995_s3 + $0x128] sm:$0xf]  ;;  %v4579_v48 = vld [vmem:[%s6995_s3 + $0x6c] sm:$0xf]  ;;  %v4182_v16 = vld [vmem:[%s6995_s3 + $0x390] sm:$0xf0] }
 0x105   :  { %2468 = vmatpush.bf16.msra.mxu1 %v3865_v35  ;;  %v4165_v35 = vor.u32 %v4676_v56, %v4164_v55  ;;  %v4214_v55 = vld [vmem:[%s6995_s3 + $0x3d0] sm:$0xf0]  ;;  %v1438_v56 = vadd.f32 %v6408_v49, %v232_v45  ;;  %v4583_v49 = vld [vmem:[%s6995_s3 + $0x8c] sm:$0xf]  ;;  %v3918_v45 = vld [vmem:[%s6995_s3 + $0x178] sm:$0xf0] }
 0x106   :  { %2478 = vmatpush.bf16.msra.mxu2 %v4041_v44 }
 0x107   :  { %2438 = vmatpush.bf16.msrb.mxu0 %v4181_v47  ;;  %v4233_v47 = vor.u32 %v4690_v53, %v4230_v19  ;;  %v4611_v19 = vld [vmem:[%s6995_s3 + $0x16c] sm:$0xf] }
 0x108   :  { %2455 = vmatpush.bf16.msra.mxu3 %v3737_v54  ;;  %v4025_v54 = vor.u32 %v4638_v34, %v4022_v39  ;;  %v3868_v34 = vld [vmem:[%s6995_s3 + $0x108] sm:$0xf]  ;;  %v4601_v39 = vld [vmem:[%s6995_s3 + $0x114] sm:$0xf0] }
 0x109   :  { %2513 = vmatpush.bf16.msrb.mxu1 %v3981_v23  ;;  %v1465_v2 = vpop.f32.mrf.mxu0  ;;  %v4609_v23 = vld [vmem:[%s6995_s3 + $0x154] sm:$0xf0] }
 0x10a   :  { %2479 = vmatpush.bf16.msra.mxu2 %v4025_v54  ;;  %v3901_v32 = vor.u32 %v4609_v23, %v3900_v9  ;;  %v4686_v54 = vld [vmem:[%s6995_s3 + $0x3c4] sm:$0xf]  ;;  %v3806_v2 = vld [vmem:[%s6995_s3 + $0x98] sm:$0xf0] }
 0x10b   :  { %2456 = vmatmul.bf16.vlgmr.msra.gmra.mxu3 %v6186_v46  ;;  %2439 = vmatpush.bf16.msrb.mxu0 %v4165_v35  ;;  %v1439_v14 = vpop.f32.mrf.mxu1  ;;  %v4217_v35 = vor.u32 %v4686_v54, %v4214_v55  ;;  %v4674_v23 = vld [vmem:[%s6995_s3 + $0x364] sm:$0xf]  ;;  %v4134_v55 = vld [vmem:[%s6995_s3 + $0x330] sm:$0xf0] }
 0x10c   :  { %2500 = vmatpush.bf16.msrb.mxu3 %v3853_v58  ;;  %v3932_v58 = vld [vmem:[%s6995_s3 + $0x188] sm:$0xf]  ;;  %v3790_v14 = vld [vmem:[%s6995_s3 + $0x78] sm:$0xf0]  ;;  %v4666_v54 = vld [vmem:[%s6995_s3 + $0x324] sm:$0xf] }
 0x10d   :  { %2514 = vmatpush.bf16.msrb.mxu1 %v3965_v42  ;;  %v3933_v4 = vor.u32 %v4617_v59, %v3932_v58  ;;  %v6460_v57 = vpop.f32.mrf.mxu2  ;;  %v4664_v42 = vld [vmem:[%s6995_s3 + $0x30c] sm:$0xf0]  ;;  %v4627_v58 = vld [vmem:[%s6995_s3 + $0x1ec] sm:$0xf]  ;;  %v3982_v59 = vld [vmem:[%s6995_s3 + $0x1f8] sm:$0xf0] }
 0x10e   :  { %v6443_v1 = vpop.f32.mrf.mxu3  ;;  %v4117_v44 = vor.u32 %v4664_v42, %v4116_v38  ;;  %v3758_v42 = vld [vmem:[%s6995_s3 + $0x38] sm:$0xf0] }
 0x10f   :  { %2440 = vmatpush.bf16.msrb.mxu0 %v4149_v13  ;;  %v3809_v13 = vor.u32 %v4583_v49, %v3806_v2  ;;  %v4657_v2 = vld [vmem:[%s6995_s3 + $0x2d4] sm:$0xf0] }
 0x110   :  { %2501 = vmatpush.bf16.msrb.mxu3 %v3837_v5  ;;  %v4009_v5 = vor.u32 %v4634_v63, %v4006_v0  ;;  %v3985_v0 = vor.u32 %v4627_v58, %v3982_v59  ;;  %v4607_v58 = vld [vmem:[%s6995_s3 + $0x14c] sm:$0xf]  ;;  %v3902_v59 = vld [vmem:[%s6995_s3 + $0x158] sm:$0xf0] }
 0x111   :  { %2515 = vmatpush.bf16.msrb.mxu1 %v3949_v51  ;;  %v6502_v10 = vpop.f32.mrf.mxu0  ;;  %v4587_v51 = vld [vmem:[%s6995_s3 + $0xac] sm:$0xf] }
 0x112   :  { %2480 = vmatpush.bf16.msra.mxu2 %v4009_v5  ;;  %2469 = vmatmul.bf16.vlgmr.msra.gmra.mxu1 %v6373_v27  ;;  %v3825_v62 = vor.u32 %v4587_v51, %v3822_v52  ;;  %v1451_v5 = vadd.f32 %v6443_v1, %v1438_v56  ;;  %v3969_v1 = vor.u32 %v4623_v7, %v3966_v8  ;;  %v4567_v51 = vld [vmem:[%s6995_s3 + $0xc] sm:$0xf]  ;;  %v4118_v7 = vld [vmem:[%s6995_s3 + $0x310] sm:$0xf0] }
 0x113   :  { %2441 = vmatpush.bf16.msrb.mxu0 %v4133_v26  ;;  %v4615_v26 = vld [vmem:[%s6995_s3 + $0x18c] sm:$0xf]  ;;  %v3921_v52 = vor.u32 %v4611_v19, %v3918_v45  ;;  %v4110_v45 = vld [vmem:[%s6995_s3 + $0x2f8] sm:$0xf0] }
 0x114   :  { %2502 = vmatpush.bf16.msrb.mxu3 %v3821_v21  ;;  %v3993_v21 = vor.u32 %v4630_v17, %v3990_v18  ;;  %v1464_v17 = vadd.f32 %v6391_v40, %v1451_v5  ;;  %v4619_v18 = vld [vmem:[%s6995_s3 + $0x1ac] sm:$0xf]  ;;  %v4662_v5 = vld [vmem:[%s6995_s3 + $0x304] sm:$0xf] }
 0x115   :  { %2516 = vmatpush.bf16.msrb.mxu1 %v3933_v4  ;;  %v1478_v60 = vpop.f32.mrf.mxu2  ;;  %v4682_v4 = vld [vmem:[%s6995_s3 + $0x3a4] sm:$0xf]  ;;  %v4603_v8 = vld [vmem:[%s6995_s3 + $0x12c] sm:$0xf] }
 0x116   :  { %v1452_v37 = vpop.f32.mrf.mxu3  ;;  %2481 = vmatpush.bf16.msra.mxu2 %v3993_v21  ;;  %v4201_v11 = vor.u32 %v4682_v4, %v4198_v41  ;;  %v3793_v21 = vor.u32 %v4579_v48, %v3790_v14  ;;  %v3905_v4 = vor.u32 %v4607_v58, %v3902_v59  ;;  %v4653_v14 = vld [vmem:[%s6995_s3 + $0x2b4] sm:$0xf0]  ;;  %v4659_v19 = vld [vmem:[%s6995_s3 + $0x2ec] sm:$0xf] }
 0x117   :  { %2442 = vmatpush.bf16.msrb.mxu0 %v4117_v44  ;;  %v4150_v44 = vld [vmem:[%s6995_s3 + $0x350] sm:$0xf0] }
 0x118   :  { %2503 = vmatpush.bf16.msrb.mxu3 %v3805_v33  ;;  %v3857_v33 = vor.u32 %v4595_v24, %v3854_v25  ;;  %v4166_v24 = vld [vmem:[%s6995_s3 + $0x370] sm:$0xf0]  ;;  %v1477_v25 = vadd.f32 %v6460_v57, %v1464_v17  ;;  %v4571_v57 = vld [vmem:[%s6995_s3 + $0x2c] sm:$0xf]  ;;  %v3870_v17 = vld [vmem:[%s6995_s3 + $0x118] sm:$0xf0] }
 0x119   :  { %2517 = vmatpush.bf16.msrb.mxu1 %v3917_v20  ;;  %v1517_v63 = vpop.f32.mrf.mxu0  ;;  %v3950_v20 = vld [vmem:[%s6995_s3 + $0x1b8] sm:$0xf0] }
 0x11a   :  { %v3953_v40 = vor.u32 %v4619_v18, %v3950_v20  ;;  %v4060_v20 = vld [vmem:[%s6995_s3 + $0x288] sm:$0xf] }
 0x11b   :  { %2487 = vmatpush.bf16.msra.mxu0 %v4233_v47  ;;  %v4153_v47 = vor.u32 %v4670_v43, %v4150_v44  ;;  %v3996_v43 = vld [vmem:[%s6995_s3 + $0x208] sm:$0xf]  ;;  %v4633_v44 = vld [vmem:[%s6995_s3 + $0x214] sm:$0xf0] }
 0x11c   :  { %2504 = vmatpush.bf16.msrb.mxu3 %v3789_v50  ;;  %v3885_v50 = vor.u32 %v4605_v31, %v3884_v30  ;;  %v4169_v31 = vor.u32 %v4674_v23, %v4166_v24 }
 0x11d   :  { %2518 = vmatpush.bf16.msrb.mxu1 %v3901_v32 }
 0x11f   :  { %2488 = vmatpush.bf16.msra.mxu0 %v4217_v35 }
 0x120   :  { %2505 = vmatpush.bf16.msrb.mxu3 %v3773_v61  ;;  %v3869_v61 = vor.u32 %v4601_v39, %v3868_v34  ;;  %v4108_v34 = vld [vmem:[%s6995_s3 + $0x2e8] sm:$0xf]  ;;  %v4661_v39 = vld [vmem:[%s6995_s3 + $0x2f4] sm:$0xf0] }
 0x121   :  { %2519 = vmatpush.bf16.msrb.mxu1 %v3885_v50  ;;  %v1489_v12 = vpop.f32.mrf.mxu1 }
 0x122   :  { %v1490_v32 = vadd.f32 %v1489_v12, %v1477_v25 }
 0x123   :  { %2489 = vmatpush.bf16.msra.mxu0 %v4201_v11  ;;  %v3886_v11 = vld [vmem:[%s6995_s3 + $0x138] sm:$0xf0] }
 0x124   :  { %2506 = vmatpush.bf16.msrb.mxu3 %v3757_v15  ;;  %v4678_v15 = vld [vmem:[%s6995_s3 + $0x384] sm:$0xf] }
 0x125   :  { %2520 = vmatpush.bf16.msrb.mxu1 %v3869_v61  ;;  %v4185_v9 = vor.u32 %v4678_v15, %v4182_v16  ;;  %v6604_v30 = vpop.f32.mrf.mxu0  ;;  %v4137_v61 = vor.u32 %v4666_v54, %v4134_v55  ;;  %v3889_v15 = vor.u32 %v4603_v8, %v3886_v11  ;;  %v4599_v16 = vld [vmem:[%s6995_s3 + $0x10c] sm:$0xf]  ;;  %v4236_v54 = vld [vmem:[%s6995_s3 + $0x3e8] sm:$0xf]  ;;  %v4693_v55 = vld [vmem:[%s6995_s3 + $0x3f4] sm:$0xf0] }
 0x126   :  { %v4062_v8 = vld [vmem:[%s6995_s3 + $0x298] sm:$0xf0]  ;;  %v4204_v11 = vld [vmem:[%s6995_s3 + $0x3a8] sm:$0xf] }
 0x127   :  { %2490 = vmatpush.bf16.msra.mxu0 %v4185_v9  ;;  %v4649_v9 = vld [vmem:[%s6995_s3 + $0x294] sm:$0xf0] }
 0x128   :  { %2507 = vmatpush.bf16.msrb.mxu3 %v3741_v28  ;;  %2521 = vmatmul.bf16.vlgmr.msrb.gmra.mxu1 %v6373_v27  ;;  %v3934_v28 = vld [vmem:[%s6995_s3 + $0x198] sm:$0xf0] }
 0x129   :  { %2565 = vmatpush.bf16.msra.mxu1 %v3985_v0  ;;  %v1491_v36 = vpop.f32.mrf.mxu1  ;;  %v3937_v38 = vor.u32 %v4615_v26, %v3934_v28  ;;  %v4092_v0 = vld [vmem:[%s6995_s3 + $0x2c8] sm:$0xf]  ;;  %v4641_v26 = vld [vmem:[%s6995_s3 + $0x254] sm:$0xf0] }
 0x12a   :  { %v4093_v48 = vor.u32 %v4657_v2, %v4092_v0  ;;  %v4220_v0 = vld [vmem:[%s6995_s3 + $0x3c8] sm:$0xf]  ;;  %v4689_v2 = vld [vmem:[%s6995_s3 + $0x3d4] sm:$0xf0] }
 0x12b   :  { %2508 = vmatmul.bf16.vlgmr.msrb.gmra.mxu3 %v6186_v46  ;;  %2491 = vmatpush.bf16.msra.mxu0 %v4169_v31 }
 0x12c   :  { %2552 = vmatpush.bf16.msra.mxu3 %v3857_v33  ;;  %v3777_v33 = vor.u32 %v4575_v22, %v3774_v3  ;;  %v3873_v22 = vor.u32 %v4599_v16, %v3870_v17  ;;  %v4044_v3 = vld [vmem:[%s6995_s3 + $0x268] sm:$0xf]  ;;  %v4681_v16 = vld [vmem:[%s6995_s3 + $0x394] sm:$0xf0] }
 0x12d   :  { %2566 = vmatpush.bf16.msra.mxu1 %v3969_v1  ;;  %v1528_v60 = vpop.f32.mrf.mxu2  ;;  %v1543_v35 = vpop.f32.mrf.mxu0  ;;  %v4076_v1 = vld [vmem:[%s6995_s3 + $0x2a8] sm:$0xf] }
 0x12e   :  { %v1502_v37 = vpop.f32.mrf.mxu3  ;;  %v4077_v18 = vor.u32 %v4653_v14, %v4076_v1  ;;  %v4237_v35 = vor.u32 %v4693_v55, %v4236_v54  ;;  %v4643_v1 = vld [vmem:[%s6995_s3 + $0x26c] sm:$0xf]  ;;  %v4046_v14 = vld [vmem:[%s6995_s3 + $0x278] sm:$0xf0] }
 0x12f   :  { %v1503_v53 = vadd.f32 %v1502_v37, %v1490_v32  ;;  %2492 = vmatpush.bf16.msra.mxu0 %v4153_v47  ;;  %v4049_v17 = vor.u32 %v4643_v1, %v4046_v14  ;;  %v4174_v54 = vld [vmem:[%s6995_s3 + $0x378] sm:$0xf0] }
 0x130   :  { %2553 = vmatpush.bf16.msra.mxu3 %v3841_v29  ;;  %v3761_v29 = vor.u32 %v4571_v57, %v3758_v42 }
 0x131   :  { %2567 = vmatpush.bf16.msra.mxu1 %v3953_v40  ;;  %v1516_v50 = vadd.f32 %v6502_v10, %v1503_v53  ;;  %v3742_v10 = vld [vmem:[%s6995_s3 + $0x18] sm:$0xf0]  ;;  %v4061_v40 = vor.u32 %v4649_v9, %v4060_v20  ;;  %v4639_v20 = vld [vmem:[%s6995_s3 + $0x24c] sm:$0xf] }
 0x132   :  { %v3745_v63 = vor.u32 %v4567_v51, %v3742_v10  ;;  %v4094_v51 = vld [vmem:[%s6995_s3 + $0x2d8] sm:$0xf0] }
 0x133   :  { %v1612_v56 = vmax.f32 %v1516_v50, 0.0  ;;  %2493 = vmatpush.bf16.msra.mxu0 %v4137_v61  ;;  %v3997_v50 = vor.u32 %v4633_v44, %v3996_v43  ;;  %v4651_v61 = vld [vmem:[%s6995_s3 + $0x2ac] sm:$0xf]  ;;  %v4030_v9 = vld [vmem:[%s6995_s3 + $0x258] sm:$0xf0] }
 0x134   :  { %2554 = vmatpush.bf16.msra.mxu3 %v3825_v62  ;;  %v4109_v62 = vor.u32 %v4661_v39, %v4108_v34  ;;  %v4655_v39 = vld [vmem:[%s6995_s3 + $0x2cc] sm:$0xf]  ;;  %v4238_v43 = vld [vmem:[%s6995_s3 + $0x3f8] sm:$0xf0] }
 0x135   :  { %2568 = vmatpush.bf16.msra.mxu1 %v3937_v38  ;;  %v6649_v49 = vpack.c.bf16 %v1612_v56, %v1612_v56  ;;  %v1530_v12 = vpop.f32.mrf.mxu2  ;;  %v4097_v59 = vor.u32 %v4655_v39, %v4094_v51  ;;  %v6847_v39 = vld [vmem:[%s6996_s4] sm:$0xf] }
 0x136   :  { %v1504_v41 = vpop.f32.mrf.mxu3  ;;  %v4685_v12 = vld [vmem:[%s6995_s3 + $0x3b4] sm:$0xf0] }
 0x137   :  { %2430 = vmatmul.bf16.vlgmr.msrb.gmra.mxu2 %v6649_v49 }
 0x138   :  { %2555 = vmatpush.bf16.msra.mxu3 %v3809_v13  ;;  %v4121_v13 = vor.u32 %v4662_v5, %v4118_v7  ;;  %2526 = vmatpush.bf16.msrb.mxu2 %v4109_v62  ;;  %v4078_v62 = vld [vmem:[%s6995_s3 + $0x2b8] sm:$0xf0]  ;;  %v4221_v5 = vor.u32 %v4689_v2, %v4220_v0  ;;  %v4647_v7 = vld [vmem:[%s6995_s3 + $0x28c] sm:$0xf] }
 0x139   :  { %2569 = vmatpush.bf16.msra.mxu1 %v3921_v52  ;;  %v4667_v2 = vld [vmem:[%s6995_s3 + $0x32c] sm:$0xf] }
 0x13a   :  { %2494 = vmatpush.bf16.msra.mxu0 %v4121_v13  ;;  %v4065_v13 = vor.u32 %v4647_v7, %v4062_v8  ;;  %v4126_v7 = vld [vmem:[%s6995_s3 + $0x318] sm:$0xf0] }
 0x13c   :  { %2556 = vmatpush.bf16.msra.mxu3 %v3793_v21  ;;  %2527 = vmatpush.bf16.msrb.mxu2 %v4093_v48  ;;  %v233_v21 = vperm.slane %v6016_v6, 3  ;;  %v4028_v6 = vld [vmem:[%s6995_s3 + $0x248] sm:$0xf]  ;;  %v4205_v48 = vor.u32 %v4685_v12, %v4204_v11 }
 0x13d   :  { %2570 = vmatpush.bf16.msra.mxu1 %v3905_v4  ;;  %v4029_v32 = vor.u32 %v4641_v26, %v4028_v6  ;;  %v4081_v4 = vor.u32 %v4651_v61, %v4078_v62 }
 0x13e   :  { %v1529_v23 = vadd.f32 %v1528_v60, %v233_v21  ;;  %v4172_v21 = vld [vmem:[%s6995_s3 + $0x368] sm:$0xf] }
 0x140   :  { %2557 = vmatpush.bf16.msra.mxu3 %v3777_v33  ;;  %2528 = vmatpush.bf16.msrb.mxu2 %v4077_v18  ;;  %v1542_v28 = vadd.f32 %v6604_v30, %v1529_v23  ;;  %v4012_v33 = vld [vmem:[%s6995_s3 + $0x228] sm:$0xf]  ;;  %v4014_v23 = vld [vmem:[%s6995_s3 + $0x238] sm:$0xf0] }
 0x141   :  { %2571 = vmatpush.bf16.msra.mxu1 %v3889_v15  ;;  %v1554_v24 = vpop.f32.mrf.mxu1  ;;  %v4188_v15 = vld [vmem:[%s6995_s3 + $0x388] sm:$0xf] }
 0x142   :  { %v1555_v36 = vadd.f32 %v1554_v24, %v1542_v28  ;;  %v4189_v18 = vor.u32 %v4681_v16, %v4188_v15  ;;  %v4156_v24 = vld [vmem:[%s6995_s3 + $0x348] sm:$0xf]  ;;  %v4701_v15 = vld [vmem:[%s6997_s5 + $0x38] sm:$0xff] }
 0x144   :  { %2558 = vmatpush.bf16.msra.mxu3 %v3761_v29  ;;  %2529 = vmatpush.bf16.msrb.mxu2 %v4061_v40  ;;  %v4113_v29 = vor.u32 %v4659_v19, %v4110_v45  ;;  %v4033_v40 = vor.u32 %v4639_v20, %v4030_v9  ;;  %v4687_v19 = vld [vmem:[%s6995_s3 + $0x3cc] sm:$0xf]  ;;  %v4222_v45 = vld [vmem:[%s6995_s3 + $0x3d8] sm:$0xf0] }
 0x145   :  { %2572 = vmatpush.bf16.msra.mxu1 %v3873_v22  ;;  %v1593_v31 = vpop.f32.mrf.mxu0  ;;  %v4677_v22 = vld [vmem:[%s6995_s3 + $0x374] sm:$0xf0] }
 0x147   :  { %2482 = vmatmul.bf16.vlgmr.msra.gmra.mxu2 %v6649_v49 }
 0x148   :  { %2559 = vmatpush.bf16.msra.mxu3 %v3745_v63  ;;  %2573 = vmatmul.bf16.vlgmr.msra.gmra.mxu1 %v6373_v27  ;;  %v4637_v27 = vld [vmem:[%s6995_s3 + $0x234] sm:$0xf0] }
 0x149   :  { %v1556_v57 = vpop.f32.mrf.mxu1  ;;  %v4013_v30 = vor.u32 %v4637_v27, %v4012_v33  ;;  %v4140_v33 = vld [vmem:[%s6995_s3 + $0x328] sm:$0xf]  ;;  %v4669_v27 = vld [vmem:[%s6995_s3 + $0x334] sm:$0xf0] }
 0x14a   :  { %v4141_v57 = vor.u32 %v4669_v27, %v4140_v33  ;;  %v1751_v27 = vperm.slane %v6847_v39, 3 }
 0x14b   :  { %2560 = vmatmul.bf16.vlgmr.msra.gmra.mxu3 %v6186_v46  ;;  %v4645_v46 = vld [vmem:[%s6995_s3 + $0x274] sm:$0xf0] }
 0x14c   :  { %v4045_v25 = vor.u32 %v4645_v46, %v4044_v3  ;;  %v4173_v3 = vor.u32 %v4677_v22, %v4172_v21  ;;  %v4635_v46 = vld [vmem:[%s6995_s3 + $0x22c] sm:$0xf]  ;;  %2872 = vmatpush.bf16.msrb.mxu3 %v4701_v15 }
 0x14d   :  { %v1580_v42 = vpop.f32.mrf.mxu2  ;;  %v1595_v60 = vpop.f32.mrf.mxu0  ;;  %v4017_v26 = vor.u32 %v4635_v46, %v4014_v23  ;;  %v4699_v21 = vld [vmem:[%s6997_s5 + $0x28] sm:$0xff]  ;;  %v4697_v46 = vld [vmem:[%s6997_s5 + $0x18] sm:$0xff] }
 0x14e   :  { %2530 = vmatpush.bf16.msrb.mxu2 %v4045_v25  ;;  %v1567_v37 = vpop.f32.mrf.mxu3  ;;  %v4673_v25 = vld [vmem:[%s6995_s3 + $0x354] sm:$0xf0]  ;;  %v4225_v60 = vor.u32 %v4687_v19, %v4222_v45  ;;  %v4703_v19 = vld [vmem:[%s6997_s5 + $0x48] sm:$0xff] }
 0x14f   :  { %v1568_v38 = vadd.f32 %v1567_v37, %v1555_v36  ;;  %v4157_v28 = vor.u32 %v4673_v25, %v4156_v24  ;;  %v4124_v37 = vld [vmem:[%s6995_s3 + $0x308] sm:$0xf]  ;;  %v4709_v23 = vld [vmem:[%s6997_s5 + $0x78] sm:$0xff]  ;;  %v4696_v25 = vld [vmem:[%s6997_s5 + $0x10] sm:$0xff] }
 0x150   :  { %2885 = vmatpush.bf16.msrb.mxu1 %v4709_v23  ;;  %v4715_v45 = vld [vmem:[%s6997_s5 + $0xa8] sm:$0xff] }
 0x151   :  { %v1581_v53 = vadd.f32 %v1580_v42, %v1568_v38  ;;  %v1606_v34 = vpop.f32.mrf.mxu1  ;;  %v4665_v38 = vld [vmem:[%s6995_s3 + $0x314] sm:$0xf0] }
 0x152   :  { %2531 = vmatpush.bf16.msrb.mxu2 %v4029_v32  ;;  %v3998_v32 = vld [vmem:[%s6995_s3 + $0x218] sm:$0xf0]  ;;  %v4125_v44 = vor.u32 %v4665_v38, %v4124_v37 }
 0x153   :  { %v1594_v47 = vadd.f32 %v1593_v31, %v1581_v53  ;;  %v4631_v31 = vld [vmem:[%s6995_s3 + $0x20c] sm:$0xf] }
 0x154   :  { %v4001_v36 = vor.u32 %v4631_v31, %v3998_v32  ;;  %v4694_v31 = vld [vmem:[%s6997_s5] sm:$0xff] }
 0x155   :  { %v1607_v52 = vadd.f32 %v1606_v34, %v1594_v47  ;;  %v1582_v56 = vpop.f32.mrf.mxu2  ;;  %v4683_v47 = vld [vmem:[%s6995_s3 + $0x3ac] sm:$0xf]  ;;  %v4190_v34 = vld [vmem:[%s6995_s3 + $0x398] sm:$0xf0]  ;;  %v4706_v32 = vld [vmem:[%s6997_s5 + $0x60] sm:$0xff] }
 0x156   :  { %2532 = vmatpush.bf16.msrb.mxu2 %v4013_v30  ;;  %v1569_v10 = vpop.f32.mrf.mxu3  ;;  %v4691_v30 = vld [vmem:[%s6995_s3 + $0x3ec] sm:$0xf] }
 0x157   :  { %v1613_v58 = vmax.f32 %v1607_v52, 0.0  ;;  %v4241_v53 = vor.u32 %v4691_v30, %v4238_v43  ;;  %v1748_v52 = vperm.slane %v6847_v39, 0  ;;  %v4675_v10 = vld [vmem:[%s6995_s3 + $0x36c] sm:$0xf]  ;;  %v4716_v30 = vld [vmem:[%s6997_s5 + $0xb0] sm:$0xff] }
 0x158   :  { %v4177_v55 = vor.u32 %v4675_v10, %v4174_v54  ;;  %v4711_v10 = vld [vmem:[%s6997_s5 + $0x88] sm:$0xff] }
 0x159   :  { %v6741_v63 = vpack.c.bf16 %v1613_v58, %v1613_v58  ;;  %v1608_v41 = vpop.f32.mrf.mxu1  ;;  %v4671_v58 = vld [vmem:[%s6995_s3 + $0x34c] sm:$0xf] }
 0x15a   :  { %2533 = vmatpush.bf16.msrb.mxu2 %v3997_v50  ;;  %v4206_v50 = vld [vmem:[%s6995_s3 + $0x3b8] sm:$0xf0] }
 0x15b   :  { %2443 = vmatmul.bf16.vlgmr.msrb.gmra.mxu0 %v6741_v63 }
 0x15c   :  { %2539 = vmatpush.bf16.msrb.mxu0 %v4237_v35 }
 0x15d   :  { %2534 = vmatmul.bf16.vlgmr.msrb.gmra.mxu2 %v6649_v49 }
 0x15e   :  { %2578 = vmatpush.bf16.msra.mxu2 %v4113_v29  ;;  %v4679_v29 = vld [vmem:[%s6995_s3 + $0x38c] sm:$0xf] }
 0x15f   :  { %v4193_v51 = vor.u32 %v4679_v29, %v4190_v34  ;;  %v4713_v34 = vld [vmem:[%s6997_s5 + $0x98] sm:$0xff] }
 0x160   :  { %2540 = vmatpush.bf16.msrb.mxu0 %v4221_v5  ;;  %v4663_v5 = vld [vmem:[%s6995_s3 + $0x30c] sm:$0xf] }
 0x161   :  { %v4129_v12 = vor.u32 %v4663_v5, %v4126_v7 }
 0x162   :  { %2579 = vmatpush.bf16.msra.mxu2 %v4097_v59  ;;  %v4158_v59 = vld [vmem:[%s6995_s3 + $0x358] sm:$0xf0] }
 0x163   :  { %v4161_v0 = vor.u32 %v4671_v58, %v4158_v59  ;;  %v4710_v58 = vld [vmem:[%s6997_s5 + $0x80] sm:$0xff]  ;;  %v4725_v59 = vld [vmem:[%s6997_s5 + $0xf8] sm:$0xff] }
 0x164   :  { %2541 = vmatpush.bf16.msrb.mxu0 %v4205_v48 }
 0x166   :  { %2580 = vmatpush.bf16.msra.mxu2 %v4081_v4  ;;  %v4142_v4 = vld [vmem:[%s6995_s3 + $0x338] sm:$0xf0] }
 0x167   :  { %v4145_v41 = vor.u32 %v4667_v2, %v4142_v4  ;;  %v4723_v2 = vld [vmem:[%s6997_s5 + $0xe8] sm:$0xff] }
 0x168   :  { %2542 = vmatpush.bf16.msrb.mxu0 %v4189_v18  ;;  %v4700_v18 = vld [vmem:[%s6997_s5 + $0x30] sm:$0xff] }
 0x169   :  { %2873 = vmatpush.bf16.msrb.mxu3 %v4700_v18 }
 0x16a   :  { %2581 = vmatpush.bf16.msra.mxu2 %v4065_v13  ;;  %v1749_v13 = vperm.slane %v6847_v39, 1 }
 0x16b   :  { %2495 = vmatmul.bf16.vlgmr.msra.gmra.mxu0 %v6741_v63 }
 0x16c   :  { %2543 = vmatpush.bf16.msrb.mxu0 %v4173_v3 }
 0x16d   :  { %2874 = vmatpush.bf16.msrb.mxu3 %v4699_v21 }
 0x16e   :  { %2582 = vmatpush.bf16.msra.mxu2 %v4049_v17  ;;  %v2405_v6 = vpop.f32.mrf.mxu3  ;;  %v1750_v17 = vperm.slane %v6847_v39, 2  ;;  %v4712_v39 = vld [vmem:[%s6997_s5 + $0x90] sm:$0xff] }
 0x16f   :  { %v2406_v56 = vadd.f32 %v2405_v6, %v1748_v52  ;;  %v4708_v6 = vld [vmem:[%s6997_s5 + $0x70] sm:$0xff] }
 0x170   :  { %2544 = vmatpush.bf16.msrb.mxu0 %v4157_v28  ;;  %2886 = vmatpush.bf16.msrb.mxu1 %v4708_v6  ;;  %v4707_v28 = vld [vmem:[%s6997_s5 + $0x68] sm:$0xff] }
 0x172   :  { %2583 = vmatpush.bf16.msra.mxu2 %v4033_v40  ;;  %v4698_v40 = vld [vmem:[%s6997_s5 + $0x20] sm:$0xff] }
 0x173   :  { %2875 = vmatpush.bf16.msrb.mxu3 %v4698_v40 }
 0x174   :  { %2545 = vmatpush.bf16.msrb.mxu0 %v4141_v57  ;;  %2887 = vmatpush.bf16.msrb.mxu1 %v4707_v28  ;;  %v4717_v57 = vld [vmem:[%s6997_s5 + $0xb8] sm:$0xff] }
 0x176   :  { %2584 = vmatpush.bf16.msra.mxu2 %v4017_v26  ;;  %v2407_v42 = vpop.f32.mrf.mxu3  ;;  %v4695_v26 = vld [vmem:[%s6997_s5 + $0x8] sm:$0xff] }
 0x177   :  { %2876 = vmatpush.bf16.msrb.mxu3 %v4697_v46  ;;  %v4704_v42 = vld [vmem:[%s6997_s5 + $0x50] sm:$0xff] }
 0x178   :  { %2546 = vmatpush.bf16.msrb.mxu0 %v4125_v44  ;;  %2888 = vmatpush.bf16.msrb.mxu1 %v4706_v32 }
 0x17a   :  { %2585 = vmatpush.bf16.msra.mxu2 %v4001_v36  ;;  %v4705_v36 = vld [vmem:[%s6997_s5 + $0x58] sm:$0xff] }
 0x17b   :  { %2547 = vmatmul.bf16.vlgmr.msrb.gmra.mxu0 %v6741_v63  ;;  %2877 = vmatpush.bf16.msrb.mxu3 %v4696_v25 }
 0x17c   :  { %2591 = vmatpush.bf16.msra.mxu0 %v4241_v53  ;;  %2889 = vmatpush.bf16.msrb.mxu1 %v4705_v36 }
 0x17d   :  { %2586 = vmatmul.bf16.vlgmr.msra.gmra.mxu2 %v6649_v49  ;;  %v4209_v49 = vor.u32 %v4683_v47, %v4206_v50  ;;  %v4702_v47 = vld [vmem:[%s6997_s5 + $0x40] sm:$0xff] }
 0x17e   :  { %2898 = vmatpush.bf16.msrb.mxu2 %v4717_v57  ;;  %v4714_v50 = vld [vmem:[%s6997_s5 + $0xa0] sm:$0xff] }
 0x17f   :  { %v2418_v35 = vpop.f32.mrf.mxu1  ;;  %2878 = vmatpush.bf16.msrb.mxu3 %v4695_v26 }
 0x180   :  { %2592 = vmatpush.bf16.msra.mxu0 %v4225_v60  ;;  %v6862_v62 = vadd.f32 %v2418_v35, %v2406_v56  ;;  %2890 = vmatpush.bf16.msrb.mxu1 %v4704_v42 }
 0x182   :  { %2899 = vmatpush.bf16.msrb.mxu2 %v4716_v30 }
 0x183   :  { %2879 = vmatpush.bf16.msrb.mxu3 %v4694_v31 }
 0x184   :  { %2593 = vmatpush.bf16.msra.mxu0 %v4209_v49  ;;  %2891 = vmatpush.bf16.msrb.mxu1 %v4703_v19 }
 0x186   :  { %2900 = vmatpush.bf16.msrb.mxu2 %v4715_v45 }
 0x187   :  { %v2420_v8 = vpop.f32.mrf.mxu1 }
 0x188   :  { %2594 = vmatpush.bf16.msra.mxu0 %v4193_v51  ;;  %2892 = vmatpush.bf16.msrb.mxu1 %v4702_v47 }
 0x18a   :  { %2901 = vmatpush.bf16.msrb.mxu2 %v4714_v50 }
 0x18c   :  { %2595 = vmatpush.bf16.msra.mxu0 %v4177_v55 }
 0x18e   :  { %v2457_v61 = vpop.f32.mrf.mxu3  ;;  %2902 = vmatpush.bf16.msrb.mxu2 %v4713_v34 }
 0x18f   :  { %v2458_v48 = vadd.f32 %v2457_v61, %v1749_v13  ;;  %v2470_v1 = vpop.f32.mrf.mxu1 }
 0x190   :  { %2596 = vmatpush.bf16.msra.mxu0 %v4161_v0 }
 0x191   :  { %v6877_v14 = vadd.f32 %v2470_v1, %v2458_v48  ;;  %v4720_v48 = vld [vmem:[%s6997_s5 + $0xd0] sm:$0xff] }
 0x192   :  { %2903 = vmatpush.bf16.msrb.mxu2 %v4712_v39 }
 0x194   :  { %2597 = vmatpush.bf16.msra.mxu0 %v4145_v41  ;;  %v4722_v41 = vld [vmem:[%s6997_s5 + $0xe0] sm:$0xff] }
 0x196   :  { %v2459_v11 = vpop.f32.mrf.mxu3  ;;  %2904 = vmatpush.bf16.msrb.mxu2 %v4711_v10 }
 0x197   :  { %v2472_v16 = vpop.f32.mrf.mxu1  ;;  %v4721_v11 = vld [vmem:[%s6997_s5 + $0xd8] sm:$0xff] }
 0x198   :  { %2598 = vmatpush.bf16.msra.mxu0 %v4129_v12  ;;  %v4718_v16 = vld [vmem:[%s6997_s5 + $0xc0] sm:$0xff] }
 0x19a   :  { %2905 = vmatpush.bf16.msrb.mxu2 %v4710_v58 }
 0x19b   :  { %2599 = vmatmul.bf16.vlgmr.msra.gmra.mxu0 %v6741_v63 }
 0x19c   :  { %2911 = vmatpush.bf16.msrb.mxu0 %v4725_v59 }
 0x1a5   :  { %v2522_v63 = vpop.f32.mrf.mxu1 }
 0x1ad   :  { %v2524_v24 = vpop.f32.mrf.mxu1 }
 0x1ae   :  { %v2509_v20 = vpop.f32.mrf.mxu3 }
 0x1af   :  { %v2510_v9 = vadd.f32 %v2509_v20, %v1750_v17 }
 0x1b1   :  { %v6890_v22 = vadd.f32 %v2522_v63, %v2510_v9 }
 0x1b6   :  { %v2511_v3 = vpop.f32.mrf.mxu3 }
 0x1ba   :  { %v2431_v33 = vpop.f32.mrf.mxu2 }
 0x1bb   :  { %v2432_v52 = vadd.f32 %v2431_v33, %v6862_v62  ;;  %v4724_v62 = vld [vmem:[%s6997_s5 + $0xf0] sm:$0xff] }
 0x1bc   :  { %2912 = vmatpush.bf16.msrb.mxu0 %v4724_v62 }
 0x1c0   :  { %2913 = vmatpush.bf16.msrb.mxu0 %v4723_v2 }
 0x1c2   :  { %v2433_v44 = vpop.f32.mrf.mxu2 }
 0x1c4   :  { %2914 = vmatpush.bf16.msrb.mxu0 %v4722_v41 }
 0x1c5   :  { %v2574_v43 = vpop.f32.mrf.mxu1 }
 0x1c8   :  { %2915 = vmatpush.bf16.msrb.mxu0 %v4721_v11 }
 0x1ca   :  { %v2483_v29 = vpop.f32.mrf.mxu2 }
 0x1cb   :  { %v2484_v5 = vadd.f32 %v2483_v29, %v6877_v14  ;;  %v4719_v14 = vld [vmem:[%s6997_s5 + $0xc8] sm:$0xff] }
 0x1cc   :  { %2916 = vmatpush.bf16.msrb.mxu0 %v4720_v48 }
 0x1cd   :  { %v2576_v49 = vpop.f32.mrf.mxu1 }
 0x1ce   :  { %v2561_v37 = vpop.f32.mrf.mxu3 }
 0x1cf   :  { %v2562_v38 = vadd.f32 %v2561_v37, %v1751_v27  ;;  %v4727_v27 = vld [vmem:[%s6998_s6] ss:$0 sm:$0xff] }
 0x1d0   :  { %2917 = vmatpush.bf16.msrb.mxu0 %v4719_v14 }
 0x1d1   :  { %v6932_v53 = vadd.f32 %v2574_v43, %v2562_v38 }
 0x1d2   :  { %v2485_v51 = vpop.f32.mrf.mxu2 }
 0x1d4   :  { %2918 = vmatpush.bf16.msrb.mxu0 %v4718_v16 }
 0x1d6   :  { %v2563_v60 = vpop.f32.mrf.mxu3 }
 0x1d8   :  { %v2444_v54 = vpop.f32.mrf.mxu0 }
 0x1d9   :  { %v2445_v55 = vadd.f32 %v2444_v54, %v2432_v52 }
 0x1db   :  { %v2604_v56 = vmax.f32 %v2445_v55, 0.0 }
 0x1dd   :  { %v2608_v61 = vpack.c.bf16 %v2604_v56, %v2604_v56 }
 0x1df   :  { %2880 = vmatmul.bf16.vlgmr.msrb.gmra.mxu3 %v2608_v61 }
 0x1e0   :  { %v2535_v35 = vpop.f32.mrf.mxu2  ;;  %v2446_v0 = vpop.f32.mrf.mxu0 }
 0x1e1   :  { %v2536_v15 = vadd.f32 %v2535_v35, %v6890_v22 }
 0x1e8   :  { %v2537_v4 = vpop.f32.mrf.mxu2  ;;  %v2496_v7 = vpop.f32.mrf.mxu0 }
 0x1e9   :  { %v2497_v8 = vadd.f32 %v2496_v7, %v2484_v5 }
 0x1eb   :  { %v2605_v12 = vmax.f32 %v2497_v8, 0.0 }
 0x1ed   :  { %v2609_v13 = vpack.c.bf16 %v2605_v12, %v2605_v12 }
 0x1ef   :  { %2893 = vmatmul.bf16.vlgmr.msrb.gmra.mxu1 %v2609_v13 }
 0x1f0   :  { %v2498_v1 = vpop.f32.mrf.mxu0 }
 0x1f8   :  { %v2548_v17 = vpop.f32.mrf.mxu0 }
 0x1f9   :  { %v2549_v18 = vadd.f32 %v2548_v17, %v2536_v15 }
 0x1fb   :  { %v2606_v9 = vmax.f32 %v2549_v18, 0.0 }
 0x1fd   :  { %v2610_v21 = vpack.c.bf16 %v2606_v9, %v2606_v9 }
 0x1ff   :  { %2906 = vmatmul.bf16.vlgmr.msrb.gmra.mxu2 %v2610_v21 }
 0x200   :  { %v2587_v20 = vpop.f32.mrf.mxu2  ;;  %v2550_v63 = vpop.f32.mrf.mxu0 }
 0x201   :  { %v2588_v3 = vadd.f32 %v2587_v20, %v6932_v53 }
 0x208   :  { %v2589_v40 = vpop.f32.mrf.mxu2 }
 0x218   :  { %v2600_v46 = vpop.f32.mrf.mxu0 }
 0x219   :  { %v2601_v23 = vadd.f32 %v2600_v46, %v2588_v3 }
 0x21b   :  { %v2607_v24 = vmax.f32 %v2601_v23, 0.0 }
 0x21d   :  { %v2611_v25 = vpack.c.bf16 %v2607_v24, %v2607_v24 }
 0x21f   :  { %2919 = vmatmul.bf16.vlgmr.msrb.gmra.mxu0 %v2611_v25 }
 0x220   :  { %v2602_v22 = vpop.f32.mrf.mxu0 }
 0x262   :  { %v2881_v6 = vpop.f32.mrf.mxu3 }
 0x263   :  { %v2882_v36 = vadd.f32 %v4727_v27, %v2881_v6 }
 0x26a   :  { %v2883_v26 = vpop.f32.mrf.mxu3 }
 0x26c   :  { %v2894_v28 = vpop.f32.mrf.mxu1 }
 0x26d   :  { %v2895_v57 = vadd.f32 %v2894_v28, %v2882_v36 }
 0x274   :  { %v2896_v31 = vpop.f32.mrf.mxu1 }
 0x282   :  { %v2907_v32 = vpop.f32.mrf.mxu2 }
 0x283   :  { %v2908_v37 = vadd.f32 %v2907_v32, %v2895_v57 }
 0x28a   :  { %v2909_v33 = vpop.f32.mrf.mxu2 }
 0x29c   :  { %v2920_v38 = vpop.f32.mrf.mxu0 }
 0x29d   :  { %v2921_v42 = vadd.f32 %v2920_v38, %v2908_v37 }
 0x29f   :  { %v2924_v30 = vmax.f32 %v2921_v42, 0.0 }
 0x2a1   :  { %2925 = vst [vmem:[#allocation2] sm:$0xff] %v2924_v30 }
 0x2a2   :  { %2936 = dma.vmem_to_hbm [thread:$0]  %s2932_s14, 128, %s2934_s17, [#allocation3]  }
 0x2a4   :  { %v2922_v43 = vpop.f32.mrf.mxu0 }
 0x2a5   :  { %4752 = dma.done.wait [#allocation3], 128  }
 0x2a6   :  { %4753 = vsyncadd [#allocation3], 4294967168 }
 0x2a7   :  { %2941 = vsyncpa [#allocation3], 1 }

</bundles_post_ra>
